<compile_context>
chip_gen: v7x
topology: tpu7x:2x2x1
jax: 0.10.0
libtpu: 0.0.40
codegen_flags: <defaults>
</compile_context>

<pallas_src>
import jax
import jax.numpy as jnp
from jax.experimental import pallas as pl
from jax.experimental.pallas import tpu as pltpu

EPS = 1e-5


# ------------------------------------ helpers -------------------------------------------

def _round_up(x, m):
    return ((x + m - 1) // m) * m


def _vmem_limit_bytes():
    """Generation-aware scoped-VMEM limit (per TensorCore): ~3/4 of physical VMEM.
    ~96 MiB on v5e/v6e (128 MiB physical), ~48 MiB on v7x (64 MiB per-TC)."""
    default = 64 * 1024 * 1024
    try:
        info = pltpu.get_tpu_info()
        cap = getattr(info, "vmem_capacity_bytes", None)
        if cap:
            return int(cap) * 3 // 4
    except Exception:
        pass
    return default


def _const_spec(shape):
    """Constant-index (VMEM-resident) BlockSpec, single-buffered when supported.

    These blocks never change block index, so default double-buffering only doubles the
    resident footprint (32*H^2 instead of 16*H^2 bytes for the two bf16 weights)."""
    zeros = (0,) * len(shape)
    try:
        return pl.BlockSpec(shape, lambda *_: zeros, pipeline_mode=pl.Buffered(1))
    except (TypeError, AttributeError):   # older jax without pipeline_mode / Buffered
        return pl.BlockSpec(shape, lambda *_: zeros)


# ----------------------------- pass 1: full-batch BN stats ------------------------------

def _make_stats_kernel(inv_n):
    """Accumulates sum / sum-of-squares over the batch grid axis into a resident [2, H]
    buffer and finalizes it to [scale; shift] (scale = gamma*rsqrt(var+eps),
    shift = beta - mean*scale) on the last tile, so pass 2's BN is a single FMA."""

    def bn_stats_kernel(x_ref, vec_ref, stat_ref):
        i = pl.program_id(0)

        @pl.when(i == 0)
        def _():
            stat_ref[...] = jnp.zeros_like(stat_ref)

        x = x_ref[...]                                          # (TB, H) f32
        stat_ref[0:1, :] += jnp.sum(x, axis=0, keepdims=True)   # sum
        stat_ref[1:2, :] += jnp.sum(x * x, axis=0, keepdims=True)  # sum of squares

        @pl.when(i == pl.num_programs(0) - 1)
        def _():
            h = stat_ref.shape[1]
            gamma = vec_ref[0:1, :h]
            beta = vec_ref[1:2, :h]
            mean = stat_ref[0:1, :] * inv_n
            var = jnp.maximum(stat_ref[1:2, :] * inv_n - mean * mean, 0.0)
            scale = gamma * jax.lax.rsqrt(var + EPS)
            shift = beta - mean * scale
            stat_ref[0:1, :] = scale
            stat_ref[1:2, :] = shift

    return bn_stats_kernel


# --------------------------- pass 2: fused block forward --------------------------------

def _block_kernel(x_ref, stats_ref, vec_ref, w_in_ref, w_out_ref, o_ref):
    h = x_ref.shape[1]

    x = x_ref[...]                  # (TB, H) f32 — pre-BN input (= `identity`)
    scale = stats_ref[0:1, :]       # (1, H)
    shift = stats_ref[1:2, :]       # (1, H)
    b_in = vec_ref[2:3, :]          # (1, 4H)
    b_out = vec_ref[3:4, :h]        # (1, H)

    hn = x * scale + shift          # BatchNorm as one FMA

    z = jnp.dot(hn.astype(jnp.bfloat16), w_in_ref[...],
                preferred_element_type=jnp.float32) + b_in
    z = jnp.maximum(z, 0.0)

    y = jnp.dot(z.astype(jnp.bfloat16), w_out_ref[...],
                preferred_element_type=jnp.float32) + b_out

    # Residual uses the PRE-BatchNorm input, as in SimpleBlockV3.forward.
    o_ref[...] = (y + x).astype(o_ref.dtype)
    # TODO(synk): nn.Dropout(p) training-mode stochastic masking is applied as identity
    # (eval-mode); a seeded in-kernel version would use pltpu.prng_seed/stateful_bernoulli.


# ------------------- single-tile fast path: stats fused into the block ------------------

def _make_fused_kernel(inv_n):
    """Whole (padded) batch in one VMEM tile: compute batch stats in-kernel so x is read
    from HBM exactly once (padded rows are zero and contribute nothing to sum / sum^2)."""

    def fused_kernel(x_ref, vec_ref, w_in_ref, w_out_ref, o_ref):
        h = x_ref.shape[1]
        x = x_ref[...]
        gamma = vec_ref[0:1, :h]
        beta = vec_ref[1:2, :h]
        b_in = vec_ref[2:3, :]
        b_out = vec_ref[3:4, :h]

        mean = jnp.sum(x, axis=0, keepdims=True) * inv_n
        var = jnp.maximum(jnp.sum(x * x, axis=0, keepdims=True) * inv_n - mean * mean, 0.0)
        scale = gamma * jax.lax.rsqrt(var + EPS)
        shift = beta - mean * scale

        hn = x * scale + shift
        z = jnp.dot(hn.astype(jnp.bfloat16), w_in_ref[...],
                    preferred_element_type=jnp.float32) + b_in
        z = jnp.maximum(z, 0.0)
        y = jnp.dot(z.astype(jnp.bfloat16), w_out_ref[...],
                    preferred_element_type=jnp.float32) + b_out
        o_ref[...] = (y + x).astype(o_ref.dtype)

    return fused_kernel


# --------------------------------------- wrapper ----------------------------------------

def simple_block_v3_forward(x, params, *, block_batch=None):
    """SimpleBlockV3.forward: x [N, H] f32 -> [N, H] f32 (dropout as identity)."""
    n, h = x.shape
    vmem_limit = _vmem_limit_bytes()
    budget = int(vmem_limit * 0.7)

    # Resident bf16 weights, single-buffered.  Budgeted per TensorCore (the "parallel"
    # batch grid puts a full copy in each TC's private VMEM on v7x).
    w_bytes = 2 * (h * 4 * h * 2)
    assert w_bytes <= budget, (
        "hidden_size too large for full-weight VMEM residency on this TPU generation")
    # TODO(synk): for H beyond that point, add a grid axis over the 4H dim (tile W_in
    # columns / W_out rows) with a resident accumulator instead of full-weight residency.

    # Zero-pad the batch to a tile-friendly size; zero rows contribute nothing to the
    # sums, so stats stay exact with inv_n = 1/n (the true batch size).
    if block_batch is not None:
        assert block_batch % 8 == 0, "block_batch must be a multiple of 8"
        n_pad = _round_up(n, block_batch)
    else:
        n_pad = _round_up(n, 128)
    x_p = x if n_pad == n else jnp.pad(x, ((0, n_pad - n), (0, 0)))
    inv_n = 1.0 / n

    vec, w_in, w_out = params["vec"], params["w_in"], params["w_out"]

    # rough f32-equivalent VMEM bytes per batch row in pass 2 (x, z f32+bf16, out)
    per_row_bytes = h * 4 * 2 + 4 * h * (4 + 2) + h * 4

    # ---------------- fast path: single fused tile, one HBM read of x ----------------
    if block_batch is None and n_pad <= 1024 and w_bytes + n_pad * per_row_bytes <= budget:
        out = pl.pallas_call(
            _make_fused_kernel(inv_n),
            out_shape=jax.ShapeDtypeStruct((n_pad, h), jnp.float32),
            grid=(1,),
            in_specs=[
                _const_spec((n_pad, h)),      # x (whole batch, single buffer)
                _const_spec((4, 4 * h)),      # packed gamma/beta/b_in/b_out
                _const_spec((h, 4 * h)),      # W_in  bf16
                _const_spec((4 * h, h)),      # W_out bf16
            ],
            out_specs=pl.BlockSpec((n_pad, h), lambda i: (0, 0)),
            compiler_params=pltpu.CompilerParams(
                dimension_semantics=("arbitrary",),
                vmem_limit_bytes=vmem_limit),
        )(x_p, vec, w_in, w_out)
        return out[:n] if n_pad != n else out

    # ---------------- pass 1: batch stats with its own (larger) batch tile ----------------
    stats_block = None
    for cand in (4096, 2048, 1024, 512, 256, 128):
        if cand <= n_pad and n_pad % cand == 0 and 2 * cand * h * 4 <= vmem_limit // 4:
            stats_block = cand
            break
    if stats_block is None:
        stats_block = block_batch if block_batch is not None else n_pad

    stats = pl.pallas_call(
        _make_stats_kernel(inv_n),
        out_shape=jax.ShapeDtypeStruct((2, h), jnp.float32),
        grid=(n_pad // stats_block,),
        in_specs=[pl.BlockSpec((stats_block, h), lambda i: (i, 0)),
                  _const_spec((4, 4 * h))],
        out_specs=pl.BlockSpec((2, h), lambda i: (0, 0)),
        compiler_params=pltpu.CompilerParams(
            dimension_semantics=("arbitrary",),
            vmem_limit_bytes=vmem_limit),
    )(x_p, vec)

    # ---------------- pass 2: BN FMA + MLP + residual, batch-tiled ("parallel") -----------
    if block_batch is None:
        for cand in (1024, 512, 256, 128):
            if (cand <= n_pad and n_pad % cand == 0
                    and w_bytes + 2 * cand * per_row_bytes <= budget):
                block_batch = cand
                break
        if block_batch is None:
            block_batch = 128 if n_pad % 128 == 0 else n_pad
    assert n_pad % block_batch == 0

    out = pl.pallas_call(
        _block_kernel,
        out_shape=jax.ShapeDtypeStruct((n_pad, h), jnp.float32),
        grid=(n_pad // block_batch,),
        in_specs=[
            pl.BlockSpec((block_batch, h), lambda i: (i, 0)),   # x tile (pipelined stream)
            _const_spec((2, h)),                                # [scale; shift] resident
            _const_spec((4, 4 * h)),                            # packed b_in/b_out resident
            _const_spec((h, 4 * h)),                            # W_in  bf16 resident
            _const_spec((4 * h, h)),                            # W_out bf16 resident
        ],
        out_specs=pl.BlockSpec((block_batch, h), lambda i: (i, 0)),
        compiler_params=pltpu.CompilerParams(
            dimension_semantics=("parallel",),
            vmem_limit_bytes=vmem_limit),
    )(x_p, stats, vec, w_in, w_out)
    return out[:n] if n_pad != n else out


# ------------------------------------ params / init -------------------------------------

def _torch_linear_init(key, fan_in, fan_out):
    """PyTorch nn.Linear init: U(-1/sqrt(fan_in), 1/sqrt(fan_in)).
    Returns (W_T [fan_in, fan_out], b [fan_out]) in f32."""
    kw, kb = jax.random.split(key)
    bound = 1.0 / jnp.sqrt(jnp.float32(fan_in))
    w = jax.random.uniform(kw, (fan_in, fan_out), jnp.float32, -bound, bound)
    b = jax.random.uniform(kb, (fan_out,), jnp.float32, -bound, bound)
    return w, b


def make_params(key, hidden_size):
    h = hidden_size
    k1, k2 = jax.random.split(key)
    w_in, b_in = _torch_linear_init(k1, h, 4 * h)     # self.linear
    w_out, b_out = _torch_linear_init(k2, 4 * h, h)   # self.output
    gamma = jnp.ones((h,), jnp.float32)               # BN init: gamma=1
    beta = jnp.zeros((h,), jnp.float32)               # BN init: beta=0

    # Pack all small vectors into one [4, 4H] slab (single DMA): rows = gamma, beta,
    # b_in (full 4H), b_out; H-wide rows occupy the first H lanes.
    vec = jnp.zeros((4, 4 * h), jnp.float32)
    vec = vec.at[0, :h].set(gamma)
    vec = vec.at[1, :h].set(beta)
    vec = vec.at[2, :].set(b_in)
    vec = vec.at[3, :h].set(b_out)

    return {
        "vec": vec,
        "w_in": w_in.astype(jnp.bfloat16),
        "w_out": w_out.astype(jnp.bfloat16),
        # unpacked f32 copies kept only for the plain-JAX reference check
        "gamma": gamma, "beta": beta, "b_in": b_in, "b_out": b_out,
    }


def _reference_forward(x, p):
    """Plain-JAX reference (classic unfused BN form; same bf16 MXU operands)."""
    mean = x.mean(axis=0, keepdims=True)
    var = ((x - mean) ** 2).mean(axis=0, keepdims=True)
    hn = (x - mean) / jnp.sqrt(var + EPS) * p["gamma"] + p["beta"]
    z = jnp.dot(hn.astype(jnp.bfloat16), p["w_in"],
                preferred_element_type=jnp.float32) + p["b_in"]
    z = jnp.maximum(z, 0.0)
    y = jnp.dot(z.astype(jnp.bfloat16), p["w_out"],
                preferred_element_type=jnp.float32) + p["b_out"]
    return y + x  # dropout applied as identity (eval-mode)


if __name__ == "__main__":
    HIDDEN_SIZE = 128   # lane-dense feature dim (multiple of 128)
    P_DROP = 0.5        # module hyper-parameter; dropout applied as identity (see TODO)

    key = jax.random.PRNGKey(0)
    kx1, kx2, kp = jax.random.split(key, 3)
    params = make_params(kp, HIDDEN_SIZE)

    # (a) fused single-tile fast path; batch 192 is NOT a multiple of 128, so this also
    #     exercises the zero-padding (stats stay exact via inv_n = 1/192).
    x_a = jax.random.normal(kx1, (192, HIDDEN_SIZE), jnp.float32)
    y_a = simple_block_v3_forward(x_a, params)
    jax.block_until_ready(y_a)
    ref_a = _reference_forward(x_a, params)
    assert y_a.shape == x_a.shape
    assert jnp.allclose(y_a, ref_a, atol=1e-2, rtol=1e-2), float(jnp.max(jnp.abs(y_a - ref_a)))

    # (b) two-pass path: resident stats accumulator (pass 1) + parallel batch grid (pass 2).
    x_b = jax.random.normal(kx2, (512, HIDDEN_SIZE), jnp.float32)
    y_b = simple_block_v3_forward(x_b, params, block_batch=128)
    jax.block_until_ready(y_b)
    ref_b = _reference_forward(x_b, params)
    assert y_b.shape == x_b.shape
    assert jnp.allclose(y_b, ref_b, atol=1e-2, rtol=1e-2), float(jnp.max(jnp.abs(y_b - ref_b)))

    print("KERNEL_OK")
</pallas_src>

<mosaic_0001>
module attributes {stable_mosaic.version = 11 : i64} {
  func.func @fused_kernel(%arg0: i32, %arg1: memref<256x128xf32, #tpu.memory_space<vmem>>, %arg2: memref<4x512xf32, #tpu.memory_space<vmem>>, %arg3: memref<128x512xbf16, #tpu.memory_space<vmem>>, %arg4: memref<512x128xbf16, #tpu.memory_space<vmem>>, %arg5: memref<256x128xf32, #tpu.memory_space<vmem>>) attributes {dimension_semantics = [#tpu.dimension_semantics<arbitrary>], iteration_bounds = array<i64: 1>, scalar_prefetch = 0 : i64, scratch_operands = 0 : i64, tpu.core_type = #tpu.core_type<tc>, window_params = [{pipeline_mode = #tpu.pipeline_mode<synchronous>, transform_indices = @transform_0, window_bounds = array<i64: 256, 128>}, {pipeline_mode = #tpu.pipeline_mode<synchronous>, transform_indices = @transform_1, window_bounds = array<i64: 4, 512>}, {pipeline_mode = #tpu.pipeline_mode<synchronous>, transform_indices = @transform_2, window_bounds = array<i64: 128, 512>}, {pipeline_mode = #tpu.pipeline_mode<synchronous>, transform_indices = @transform_3, window_bounds = array<i64: 512, 128>}, {pipeline_mode = #tpu.pipeline_mode<synchronous>, transform_indices = @transform_4, window_bounds = array<i64: 256, 128>}]} {
    %c0 = arith.constant 0 : index
    %c0_0 = arith.constant 0 : index
    %0 = vector.load %arg1[%c0, %c0_0] : memref<256x128xf32, #tpu.memory_space<vmem>>, vector<256x128xf32>
    %c0_1 = arith.constant 0 : index
    %c0_2 = arith.constant 0 : index
    %1 = vector.load %arg2[%c0_1, %c0_2] : memref<4x512xf32, #tpu.memory_space<vmem>>, vector<1x128xf32>
    %c1 = arith.constant 1 : index
    %c0_3 = arith.constant 0 : index
    %2 = vector.load %arg2[%c1, %c0_3] : memref<4x512xf32, #tpu.memory_space<vmem>>, vector<1x128xf32>
    %c2 = arith.constant 2 : index
    %c0_4 = arith.constant 0 : index
    %3 = vector.load %arg2[%c2, %c0_4] : memref<4x512xf32, #tpu.memory_space<vmem>>, vector<1x512xf32>
    %c3 = arith.constant 3 : index
    %c0_5 = arith.constant 0 : index
    %4 = vector.load %arg2[%c3, %c0_5] : memref<4x512xf32, #tpu.memory_space<vmem>>, vector<1x128xf32>
    %cst = arith.constant dense<0.000000e+00> : vector<128xf32>
    %5 = vector.multi_reduction <add>, %0, %cst [0] : vector<256x128xf32> to vector<128xf32>
    %6 = vector.shape_cast %5 : vector<128xf32> to vector<1x128xf32>
    %cst_6 = arith.constant 0.00520833349 : f32
    %7 = vector.broadcast %cst_6 : f32 to vector<1x128xf32>
    %8 = arith.mulf %6, %7 : vector<1x128xf32>
    %9 = arith.mulf %0, %0 : vector<256x128xf32>
    %cst_7 = arith.constant dense<0.000000e+00> : vector<128xf32>
    %10 = vector.multi_reduction <add>, %9, %cst_7 [0] : vector<256x128xf32> to vector<128xf32>
    %11 = vector.shape_cast %10 : vector<128xf32> to vector<1x128xf32>
    %cst_8 = arith.constant 0.00520833349 : f32
    %12 = vector.broadcast %cst_8 : f32 to vector<1x128xf32>
    %13 = arith.mulf %11, %12 : vector<1x128xf32>
    %14 = arith.mulf %8, %8 : vector<1x128xf32>
    %15 = arith.subf %13, %14 : vector<1x128xf32>
    %cst_9 = arith.constant 0.000000e+00 : f32
    %16 = vector.broadcast %cst_9 : f32 to vector<1x128xf32>
    %17 = arith.maximumf %15, %16 : vector<1x128xf32>
    %cst_10 = arith.constant 9.99999974E-6 : f32
    %18 = vector.broadcast %cst_10 : f32 to vector<1x128xf32>
    %19 = arith.addf %17, %18 : vector<1x128xf32>
    %20 = math.rsqrt %19 : vector<1x128xf32>
    %21 = arith.mulf %1, %20 : vector<1x128xf32>
    %22 = arith.mulf %8, %21 : vector<1x128xf32>
    %23 = arith.subf %2, %22 : vector<1x128xf32>
    %24 = vector.broadcast %21 : vector<1x128xf32> to vector<256x128xf32>
    %25 = arith.mulf %0, %24 : vector<256x128xf32>
    %26 = vector.broadcast %23 : vector<1x128xf32> to vector<256x128xf32>
    %27 = arith.addf %25, %26 : vector<256x128xf32>
    %28 = arith.truncf %27 : vector<256x128xf32> to vector<256x128xbf16>
    %c0_11 = arith.constant 0 : index
    %c0_12 = arith.constant 0 : index
    %29 = vector.load %arg3[%c0_11, %c0_12] : memref<128x512xbf16, #tpu.memory_space<vmem>>, vector<128x512xbf16>
    %cst_13 = arith.constant dense<0.000000e+00> : vector<256x512xf32>
    %30 = tpu.matmul %28, %29, %cst_13 {dimension_numbers = #tpu.dot_dimension_numbers<[1], [0], [0], [1], [0, 0, 1, 1], [], []>} : vector<256x128xbf16>, vector<128x512xbf16>, vector<256x512xf32> -> vector<256x512xf32>
    %31 = vector.broadcast %3 : vector<1x512xf32> to vector<256x512xf32>
    %32 = arith.addf %30, %31 : vector<256x512xf32>
    %cst_14 = arith.constant 0.000000e+00 : f32
    %33 = vector.broadcast %cst_14 : f32 to vector<256x512xf32>
    %34 = arith.maximumf %32, %33 : vector<256x512xf32>
    %35 = arith.truncf %34 : vector<256x512xf32> to vector<256x512xbf16>
    %c0_15 = arith.constant 0 : index
    %c0_16 = arith.constant 0 : index
    %36 = vector.load %arg4[%c0_15, %c0_16] : memref<512x128xbf16, #tpu.memory_space<vmem>>, vector<512x128xbf16>
    %cst_17 = arith.constant dense<0.000000e+00> : vector<256x128xf32>
    %37 = tpu.matmul %35, %36, %cst_17 {dimension_numbers = #tpu.dot_dimension_numbers<[1], [0], [0], [1], [0, 0, 1, 1], [], []>} : vector<256x512xbf16>, vector<512x128xbf16>, vector<256x128xf32> -> vector<256x128xf32>
    %38 = vector.broadcast %4 : vector<1x128xf32> to vector<256x128xf32>
    %39 = arith.addf %37, %38 : vector<256x128xf32>
    %40 = arith.addf %39, %0 : vector<256x128xf32>
    %c0_18 = arith.constant 0 : index
    %c0_19 = arith.constant 0 : index
    %41 = vector.load %arg5[%c0_18, %c0_19] : memref<256x128xf32, #tpu.memory_space<vmem>>, vector<256x128xf32>
    tpu.vector_store %arg5[%c0_18, %c0_19], %40 {strides = array<i32>} : memref<256x128xf32, #tpu.memory_space<vmem>>, vector<256x128xf32>,
    return
  }
  func.func @transform_0(%arg0: i32) -> (i32, i32) {
    %c0_i32 = arith.constant 0 : i32
    %c0_i32_0 = arith.constant 0 : i32
    %c0_i32_1 = arith.constant 0 : i32
    return %c0_i32, %c0_i32_0 : i32, i32
  }
  func.func @transform_1(%arg0: i32) -> (i32, i32) {
    %c0_i32 = arith.constant 0 : i32
    %c0_i32_0 = arith.constant 0 : i32
    %c0_i32_1 = arith.constant 0 : i32
    return %c0_i32, %c0_i32_0 : i32, i32
  }
  func.func @transform_2(%arg0: i32) -> (i32, i32) {
    %c0_i32 = arith.constant 0 : i32
    %c0_i32_0 = arith.constant 0 : i32
    %c0_i32_1 = arith.constant 0 : i32
    return %c0_i32, %c0_i32_0 : i32, i32
  }
  func.func @transform_3(%arg0: i32) -> (i32, i32) {
    %c0_i32 = arith.constant 0 : i32
    %c0_i32_0 = arith.constant 0 : i32
    %c0_i32_1 = arith.constant 0 : i32
    return %c0_i32, %c0_i32_0 : i32, i32
  }
  func.func @transform_4(%arg0: i32) -> (i32, i32) {
    %c0_i32 = arith.constant 0 : i32
    %c0_i32_0 = arith.constant 0 : i32
    %c0_i32_1 = arith.constant 0 : i32
    return %c0_i32, %c0_i32_0 : i32, i32
  }
}

</mosaic_0001>

<bundles_post_ra>
// kernel: tpu_custom_call.1
= control target key start
LH: loop header
LB: loop body
LE: loop exit
PB: predicated region body
PF: predicated region fallthrough
CT: control target
= control target key end

     0   :  { %9 = vsyncpa [#allocation3], 0  ;;  %s2923_s0 = inlined_call_operand.hbm [shape: f32[256,128], index: 0, kind: input, shape index: {}]   ;;  %s2924_s1 = inlined_call_operand.hbm [shape: f32[4,512], index: 1, kind: input, shape index: {}]   ;;  %s2925_s2 = inlined_call_operand.hbm [shape: bf16[128,512], index: 2, kind: input, shape index: {}]   ;;  %s2926_s3 = inlined_call_operand.hbm [shape: bf16[512,128], index: 3, kind: input, shape index: {}]   ;;  %s2927_s4 = inlined_call_operand.hbm [shape: f32[256,128], index: 4, kind: output, shape index: {}]  }
   0x1   :  { %10 = vsyncpa [#allocation6], 0 }
   0x2   :  { %11 = vsyncpa [#allocation9], 0 }
   0x3   :  { %12 = vsyncpa [#allocation4], 0  ;;  %s2302_s15 = smov [#allocation5]   ;;  %s2303_s17 = smov [#allocation2]  }
   0x4   :  { %s31_s16 = sshll.u32 %s2302_s15, 4  ;;  %s18_s18 = sshll.u32 %s2303_s17, 4  ;;  %s32_s16 = int_to_ptr.vmem [resolvable:$true] %s31_s16  ;;  %s2339_s18 = int_to_ptr.vmem [resolvable:$true] %s18_s18 }
   0x5   :  { %s2184_s21 = scalar_lea.hbm %s2924_s1, 256 }
   0x6   :  { %p2185_p0 = scmp.ne.s32.totalorder %s2924_s1, %s2184_s21  ;;  %p2188_p1 = scmp.lt.u32.totalorder %s2184_s21, %s2924_s1 }
   0x8   :  { %p2190_p2 = pnand %p2188_p1, %p2185_p0 }
   0xa   :  { %2193 = shalt.err (!%p2190_p2)
}
   0xb   :  { %s2194_s26 = scalar_lea.vmem %s32_s16, 256  ;;  %p2199_p4 = scmp.lt.s32.totalorder %s32_s16, %s32_s16 }
   0xc   :  { %p2195_p3 = scmp.ne.s32.totalorder %s32_s16, %s2194_s26  ;;  %p2200_p5 = scmp.lt.s32.totalorder %s2194_s26, %s2194_s26 }
   0xe   :  { %p2201_p6 = por %p2200_p5, %p2199_p4 }
  0x10   :  { %p2202_p7 = pnand %p2201_p6, %p2195_p3 }
  0x12   :  { %2205 = shalt.err (!%p2202_p7)
}
  0x13   :  { %34 = dma.hbm_to_vmem [thread:$0]  %s2924_s1, 256, %s32_s16, [#allocation6]  }
  0x14   :  { %s2206_s5 = scalar_lea.hbm %s2923_s0, 4096 }
  0x15   :  { %p2207_p8 = scmp.ne.s32.totalorder %s2923_s0, %s2206_s5  ;;  %p2210_p9 = scmp.lt.u32.totalorder %s2206_s5, %s2923_s0 }
  0x17   :  { %p2212_p10 = pnand %p2210_p9, %p2207_p8 }
  0x19   :  { %2215 = shalt.err (!%p2212_p10)
}
  0x1a   :  { %s2216_s10 = scalar_lea.vmem %s2339_s18, 4096  ;;  %p2221_p12 = scmp.lt.s32.totalorder %s2339_s18, %s2339_s18 }
  0x1b   :  { %p2217_p11 = scmp.ne.s32.totalorder %s2339_s18, %s2216_s10  ;;  %p2222_p13 = scmp.lt.s32.totalorder %s2216_s10, %s2216_s10 }
  0x1d   :  { %p2223_p0 = por %p2222_p13, %p2221_p12 }
  0x1f   :  { %p2224_p1 = pnand %p2223_p0, %p2217_p11 }
  0x21   :  { %2227 = shalt.err (!%p2224_p1)
}
  0x22   :  { %s2304_s1 = smov 128   ;;  %s2305_s11 = smov 8  }
  0x23   :  { %24 = dma.hbm_to_vmem [thread:$0]  %s2923_s0, 4096, %s2339_s18, [#allocation3], %s2304_s1, %s2304_s1, %s2305_s11  }
  0x24   :  { %s2306_s14 = smov [#allocation7]   ;;  %s2228_s19 = scalar_lea.hbm %s2925_s2, 4096 }
  0x25   :  { %s40_s15 = sshll.u32 %s2306_s14, 4  ;;  %p2229_p2 = scmp.ne.s32.totalorder %s2925_s2, %s2228_s19  ;;  %s41_s15 = int_to_ptr.vmem [resolvable:$true] %s40_s15 }
  0x26   :  { %p2232_p3 = scmp.lt.u32.totalorder %s2228_s19, %s2925_s2 }
  0x28   :  { %p2234_p4 = pnand %p2232_p3, %p2229_p2 }
  0x2a   :  { %2237 = shalt.err (!%p2234_p4)
}
  0x2b   :  { %s2238_s24 = scalar_lea.vmem %s41_s15, 4096  ;;  %p2243_p6 = scmp.lt.s32.totalorder %s41_s15, %s41_s15 }
  0x2c   :  { %p2239_p5 = scmp.ne.s32.totalorder %s41_s15, %s2238_s24  ;;  %p2244_p7 = scmp.lt.s32.totalorder %s2238_s24, %s2238_s24 }
  0x2e   :  { %p2245_p8 = por %p2244_p7, %p2243_p6 }
  0x30   :  { %p2246_p9 = pnand %p2245_p8, %p2239_p5 }
  0x32   :  { %2249 = shalt.err (!%p2246_p9)
}
  0x33   :  { %s2307_s0 = smov 256   ;;  %s2308_s18 = smov 16  }
  0x34   :  { %46 = dma.hbm_to_vmem [thread:$0]  %s2925_s2, 4096, %s41_s15, [#allocation6], %s2307_s0, %s2307_s0, %s2308_s18  }
  0x35   :  { %s2309_s27 = smov [#allocation8]   ;;  %s2250_s5 = scalar_lea.hbm %s2926_s3, 4096 }
  0x36   :  { %s52_s28 = sshll.u32 %s2309_s27, 4  ;;  %p2251_p10 = scmp.ne.s32.totalorder %s2926_s3, %s2250_s5  ;;  %s53_s28 = int_to_ptr.vmem [resolvable:$true] %s52_s28 }
  0x37   :  { %p2254_p11 = scmp.lt.u32.totalorder %s2250_s5, %s2926_s3 }
  0x39   :  { %p2256_p12 = pnand %p2254_p11, %p2251_p10 }
  0x3b   :  { %2259 = shalt.err (!%p2256_p12)
}
  0x3c   :  { %s2260_s10 = scalar_lea.vmem %s53_s28, 4096  ;;  %p2265_p0 = scmp.lt.s32.totalorder %s53_s28, %s53_s28 }
  0x3d   :  { %p2261_p13 = scmp.ne.s32.totalorder %s53_s28, %s2260_s10  ;;  %p2266_p1 = scmp.lt.s32.totalorder %s2260_s10, %s2260_s10 }
  0x3f   :  { %p2267_p2 = por %p2266_p1, %p2265_p0 }
  0x41   :  { %p2268_p3 = pnand %p2267_p2, %p2261_p13 }
  0x43   :  { %2271 = shalt.err (!%p2268_p3)
}
  0x44   :  { %s2310_s2 = smov 64   ;;  %s2311_s12 = smov 4  }
  0x45   :  { %58 = dma.hbm_to_vmem [thread:$0]  %s2926_s3, 4096, %s53_s28, [#allocation9], %s2310_s2, %s2310_s2, %s2311_s12  }
  0x46   :  { %2294 = dma.done.wait [#allocation3], 4096  }
  0x47   :  { %2295 = vsyncadd [#allocation3], 4294963200 }
  0x48   :  { %2296 = dma.done.wait [#allocation6], 4352  }
  0x49   :  { %2297 = vsyncadd [#allocation6], 4294962944 }
  0x4a   :  { %2298 = dma.done.wait [#allocation9], 4096  }
  0x4b   :  { %2299 = vsyncadd [#allocation9], 4294963200  ;;  %v2312_v0 = vmov 0   ;;  %v2070_v1 = vld [vmem:[#allocation7 + $0x4] ss:$16 sps:$4 sm:$0xff]   ;;  %v2401_v28 = vld [vmem:[#allocation2 + $0x8] sm:$0xff] }
  0x4c   :  { %558 = vmatprep.mubr.bf16.mxu0 %v2312_v0  ;;  %751 = vmatprep.mubr.bf16.mxu1 %v2312_v0  ;;  %v2072_v2 = vld [vmem:[#allocation7 + $0xc] ss:$16 sps:$4 sm:$0xff]   ;;  %v2074_v3 = vld [vmem:[#allocation7] ss:$16 sps:$4 sm:$0xff]   ;;  %v2075_v4 = vld [vmem:[#allocation7 + $0x8] ss:$16 sps:$4 sm:$0xff]   ;;  %v148_v45 = vmul.f32 %v2401_v28, %v2401_v28 }
  0x4d   :  { %526 = vmatprep.subr.bf16.mxu0 %v2070_v1  ;;  %719 = vmatprep.subr.bf16.mxu1 %v2072_v2  ;;  %v2076_v5 = vld [vmem:[#allocation7 + $0x24] ss:$16 sps:$4 sm:$0xff]   ;;  %v2078_v6 = vld [vmem:[#allocation7 + $0x2c] ss:$16 sps:$4 sm:$0xff]   ;;  %v2080_v7 = vld [vmem:[#allocation7 + $0x20] ss:$16 sps:$4 sm:$0xff]  }
  0x4e   :  { %527 = vmatpush1.bf16.msra.mxu0 %v2074_v3  ;;  %720 = vmatpush1.bf16.msra.mxu1 %v2075_v4  ;;  %v2081_v8 = vld [vmem:[#allocation7 + $0x28] ss:$16 sps:$4 sm:$0xff]   ;;  %v2082_v9 = vld [vmem:[#allocation7 + $0x44] ss:$16 sps:$4 sm:$0xff]   ;;  %v2084_v10 = vld [vmem:[#allocation7 + $0x4c] ss:$16 sps:$4 sm:$0xff]  }
  0x4f   :  { %528 = vmatprep.subr.bf16.mxu0 %v2076_v5  ;;  %721 = vmatprep.subr.bf16.mxu1 %v2078_v6  ;;  %v2086_v11 = vld [vmem:[#allocation7 + $0x40] ss:$16 sps:$4 sm:$0xff]   ;;  %v2087_v12 = vld [vmem:[#allocation7 + $0x48] ss:$16 sps:$4 sm:$0xff]   ;;  %v2088_v13 = vld [vmem:[#allocation7 + $0x64] ss:$16 sps:$4 sm:$0xff]  }
  0x50   :  { %v2090_v14 = vld [vmem:[#allocation7 + $0x6c] ss:$16 sps:$4 sm:$0xff]   ;;  %v2092_v15 = vld [vmem:[#allocation7 + $0x60] ss:$16 sps:$4 sm:$0xff]   ;;  %v2093_v16 = vld [vmem:[#allocation7 + $0x68] ss:$16 sps:$4 sm:$0xff]  }
  0x51   :  { %v2094_v17 = vld [vmem:[#allocation7 + $0x84] ss:$16 sps:$4 sm:$0xff]   ;;  %v2096_v18 = vld [vmem:[#allocation7 + $0x8c] ss:$16 sps:$4 sm:$0xff]   ;;  %v2098_v19 = vld [vmem:[#allocation7 + $0x80] ss:$16 sps:$4 sm:$0xff]  }
  0x52   :  { %529 = vmatpush1.bf16.msra.mxu0 %v2080_v7  ;;  %722 = vmatpush1.bf16.msra.mxu1 %v2081_v8  ;;  %v2099_v20 = vld [vmem:[#allocation7 + $0x88] ss:$16 sps:$4 sm:$0xff]   ;;  %v2100_v21 = vld [vmem:[#allocation7 + $0xa4] ss:$16 sps:$4 sm:$0xff]   ;;  %v2102_v22 = vld [vmem:[#allocation7 + $0xac] ss:$16 sps:$4 sm:$0xff]  }
  0x53   :  { %530 = vmatprep.subr.bf16.mxu0 %v2082_v9  ;;  %723 = vmatprep.subr.bf16.mxu1 %v2084_v10  ;;  %v2104_v23 = vld [vmem:[#allocation7 + $0xa0] ss:$16 sps:$4 sm:$0xff]   ;;  %v2105_v24 = vld [vmem:[#allocation7 + $0xa8] ss:$16 sps:$4 sm:$0xff]   ;;  %v2106_v25 = vld [vmem:[#allocation7 + $0xc4] ss:$16 sps:$4 sm:$0xff]  }
  0x54   :  { %v2108_v26 = vld [vmem:[#allocation7 + $0xcc] ss:$16 sps:$4 sm:$0xff]   ;;  %v2399_v27 = vld [vmem:[#allocation2] sm:$0xff]  ;;  %v2403_v29 = vld [vmem:[#allocation2 + $0x10] sm:$0xff]  ;;  %s2313_s3 = smov [#allocation10]  }
  0x55   :  { %v109_v30 = vadd.f32 %v2401_v28, %v2399_v27  ;;  %v2407_v31 = vld [vmem:[#allocation2 + $0x18] sm:$0xff]  ;;  %v2110_v32 = vld [vmem:[#allocation7 + $0xc0] ss:$16 sps:$4 sm:$0xff]   ;;  %v2112_v35 = vld [vmem:[#allocation7 + $0xe4] ss:$16 sps:$4 sm:$0xff]   ;;  %v147_v44 = vmul.f32 %v2399_v27, %v2399_v27  ;;  %v149_v48 = vmul.f32 %v2403_v29, %v2403_v29  ;;  %s1755_s15 = sshll.u32 %s2313_s3, 4  ;;  %s1756_s15 = int_to_ptr.vmem [resolvable:$true] %s1755_s15 }
  0x56   :  { %531 = vmatpush1.bf16.msra.mxu0 %v2086_v11  ;;  %724 = vmatpush1.bf16.msra.mxu1 %v2087_v12  ;;  %v2111_v33 = vld [vmem:[#allocation7 + $0xc8] ss:$16 sps:$4 sm:$0xff]   ;;  %v2114_v36 = vld [vmem:[#allocation7 + $0xec] ss:$16 sps:$4 sm:$0xff]   ;;  %v2410_v37 = vld [vmem:[#allocation2 + $0x20] sm:$0xff]  ;;  %v150_v52 = vmul.f32 %v2407_v31, %v2407_v31  ;;  %s2272_s16 = scalar_lea.vmem %s1756_s15, 4096  ;;  %p2277_p5 = scmp.lt.s32.totalorder %s1756_s15, %s1756_s15 }
  0x57   :  { %532 = vmatprep.subr.bf16.mxu0 %v2088_v13  ;;  %725 = vmatprep.subr.bf16.mxu1 %v2090_v14  ;;  %v110_v34 = vadd.f32 %v109_v30, %v2403_v29  ;;  %v2413_v39 = vld [vmem:[#allocation2 + $0x28] sm:$0xff]  ;;  %v2116_v40 = vld [vmem:[#allocation7 + $0xe0] ss:$16 sps:$4 sm:$0xff]   ;;  %v2423_v47 = vld [vmem:[#allocation2 + $0x38] sm:$0xff]  ;;  %v179_v53 = vadd.f32 %v148_v45, %v147_v44  ;;  %v151_v56 = vmul.f32 %v2410_v37, %v2410_v37  ;;  %p2273_p4 = scmp.ne.s32.totalorder %s1756_s15, %s2272_s16  ;;  %p2278_p6 = scmp.lt.s32.totalorder %s2272_s16, %s2272_s16 }
  0x58   :  { %v2117_v41 = vld [vmem:[#allocation7 + $0xe8] ss:$16 sps:$4 sm:$0xff]   ;;  %v2416_v43 = vld [vmem:[#allocation2 + $0x30] sm:$0xff]  ;;  %v2427_v49 = vld [vmem:[#allocation2 + $0x40] sm:$0xff]  ;;  %v152_v60 = vmul.f32 %v2413_v39, %v2413_v39  ;;  %v154_v5 = vmul.f32 %v2423_v47, %v2423_v47 }
  0x59   :  { %v111_v38 = vadd.f32 %v110_v34, %v2407_v31  ;;  %v2430_v51 = vld [vmem:[#allocation2 + $0x48] sm:$0xff]  ;;  %v2435_v55 = vld [vmem:[#allocation2 + $0x50] sm:$0xff]  ;;  %v180_v57 = vadd.f32 %v179_v53, %v149_v48  ;;  %v2440_v59 = vld [vmem:[#allocation2 + $0x58] sm:$0xff]  ;;  %v153_v1 = vmul.f32 %v2416_v43, %v2416_v43  ;;  %v155_v9 = vmul.f32 %v2427_v49, %v2427_v49  ;;  %p2279_p7 = por %p2278_p6, %p2277_p5 }
  0x5a   :  { %533 = vmatpush1.bf16.msra.mxu0 %v2092_v15  ;;  %726 = vmatpush1.bf16.msra.mxu1 %v2093_v16  ;;  %v2445_v63 = vld [vmem:[#allocation2 + $0x60] sm:$0xff]  ;;  %v2450_v4 = vld [vmem:[#allocation2 + $0x68] sm:$0xff]  ;;  %v2455_v8 = vld [vmem:[#allocation2 + $0x70] sm:$0xff]  ;;  %v156_v13 = vmul.f32 %v2430_v51, %v2430_v51 }
  0x5b   :  { %534 = vmatprep.subr.bf16.mxu0 %v2094_v17  ;;  %727 = vmatprep.subr.bf16.mxu1 %v2096_v18  ;;  %v112_v42 = vadd.f32 %v111_v38, %v2410_v37  ;;  %v181_v61 = vadd.f32 %v180_v57, %v150_v52  ;;  %v2460_v12 = vld [vmem:[#allocation2 + $0x78] sm:$0xff]  ;;  %v2465_v16 = vld [vmem:[#allocation2 + $0x80] sm:$0xff]  ;;  %v157_v17 = vmul.f32 %v2435_v55, %v2435_v55  ;;  %v2498_v53 = vld [vmem:[#allocation2 + $0xb0] sm:$0xff]  ;;  %p2280_p8 = pnand %p2279_p7, %p2273_p4 }
  0x5c   :  { %v163_v48 = vmul.f32 %v2465_v16, %v2465_v16 }
  0x5d   :  { %v113_v46 = vadd.f32 %v112_v42, %v2413_v39  ;;  %v182_v2 = vadd.f32 %v181_v61, %v151_v56  ;;  %v162_v42 = vmul.f32 %v2460_v12, %v2460_v12 }
  0x5e   :  { %535 = vmatpush1.bf16.msra.mxu0 %v2098_v19  ;;  %728 = vmatpush1.bf16.msra.mxu1 %v2099_v20  ;;  %v2470_v20 = vld [vmem:[#allocation2 + $0x88] sm:$0xff] }
  0x5f   :  { %536 = vmatprep.subr.bf16.mxu0 %v2100_v21  ;;  %729 = vmatprep.subr.bf16.mxu1 %v2102_v22  ;;  %v114_v50 = vadd.f32 %v113_v46, %v2416_v43  ;;  %v183_v6 = vadd.f32 %v182_v2, %v152_v60  ;;  %v158_v21 = vmul.f32 %v2440_v59, %v2440_v59  ;;  %v2493_v46 = vld [vmem:[#allocation2 + $0xa8] sm:$0xff] }
  0x61   :  { %v115_v54 = vadd.f32 %v114_v50, %v2423_v47  ;;  %v184_v10 = vadd.f32 %v183_v6, %v153_v1  ;;  %v2508_v1 = vld [vmem:[#allocation2 + $0xc0] sm:$0xff]  ;;  %v2513_v6 = vld [vmem:[#allocation2 + $0xc8] sm:$0xff] }
  0x62   :  { %537 = vmatpush1.bf16.msra.mxu0 %v2104_v23  ;;  %730 = vmatpush1.bf16.msra.mxu1 %v2105_v24  ;;  %v2475_v24 = vld [vmem:[#allocation2 + $0x90] sm:$0xff] }
  0x63   :  { %538 = vmatprep.subr.bf16.mxu0 %v2106_v25  ;;  %731 = vmatprep.subr.bf16.mxu1 %v2108_v26  ;;  %v116_v58 = vadd.f32 %v115_v54, %v2427_v49  ;;  %v185_v14 = vadd.f32 %v184_v10, %v154_v5  ;;  %v159_v25 = vmul.f32 %v2445_v63, %v2445_v63 }
  0x64   :  { %v164_v54 = vmul.f32 %v2470_v20, %v2470_v20  ;;  %v165_v60 = vmul.f32 %v2475_v24, %v2475_v24 }
  0x65   :  { %v117_v62 = vadd.f32 %v116_v58, %v2430_v51  ;;  %v186_v18 = vadd.f32 %v185_v14, %v155_v9  ;;  %v2503_v58 = vld [vmem:[#allocation2 + $0xb8] sm:$0xff] }
  0x66   :  { %539 = vmatpush1.bf16.msra.mxu0 %v2110_v32  ;;  %732 = vmatpush1.bf16.msra.mxu1 %v2111_v33  ;;  %v160_v32 = vmul.f32 %v2450_v4, %v2450_v4 }
  0x67   :  { %540 = vmatprep.subr.bf16.mxu0 %v2112_v35  ;;  %733 = vmatprep.subr.bf16.mxu1 %v2114_v36  ;;  %v118_v3 = vadd.f32 %v117_v62, %v2435_v55  ;;  %v187_v22 = vadd.f32 %v186_v18, %v156_v13  ;;  %v2483_v35 = vld [vmem:[#allocation2 + $0x98] sm:$0xff]  ;;  %v161_v36 = vmul.f32 %v2455_v8, %v2455_v8 }
  0x68   :  { %v166_v2 = vmul.f32 %v2483_v35, %v2483_v35  ;;  %v168_v13 = vmul.f32 %v2493_v46, %v2493_v46  ;;  %v169_v18 = vmul.f32 %v2498_v53, %v2498_v53 }
  0x69   :  { %v119_v7 = vadd.f32 %v118_v3, %v2440_v59  ;;  %v188_v26 = vadd.f32 %v187_v22, %v157_v17  ;;  %v2523_v17 = vld [vmem:[#allocation2 + $0xd8] sm:$0xff]  ;;  %v2528_v22 = vld [vmem:[#allocation2 + $0xe0] sm:$0xff] }
  0x6a   :  { %541 = vmatpush1.bf16.msra.mxu0 %v2116_v40  ;;  %734 = vmatpush1.bf16.msra.mxu1 %v2117_v41  ;;  %v2488_v41 = vld [vmem:[#allocation2 + $0xa0] sm:$0xff] }
  0x6b   :  { %v120_v11 = vadd.f32 %v119_v7, %v2445_v63  ;;  %v189_v33 = vadd.f32 %v188_v26, %v158_v21  ;;  %v167_v7 = vmul.f32 %v2488_v41, %v2488_v41 }
  0x6d   :  { %v121_v15 = vadd.f32 %v120_v11, %v2450_v4  ;;  %v190_v38 = vadd.f32 %v189_v33, %v159_v25  ;;  %v2518_v11 = vld [vmem:[#allocation2 + $0xd0] sm:$0xff] }
  0x6f   :  { %v122_v19 = vadd.f32 %v121_v15, %v2455_v8  ;;  %v191_v44 = vadd.f32 %v190_v38, %v160_v32  ;;  %v171_v32 = vmul.f32 %v2508_v1, %v2508_v1  ;;  %v172_v38 = vmul.f32 %v2513_v6, %v2513_v6 }
  0x71   :  { %v123_v23 = vadd.f32 %v122_v19, %v2460_v12  ;;  %v192_v50 = vadd.f32 %v191_v44, %v161_v36  ;;  %v2538_v36 = vld [vmem:[#allocation2 + $0xf0] sm:$0xff]  ;;  %v2543_v44 = vld [vmem:[#allocation2 + $0xf8] sm:$0xff] }
  0x73   :  { %v124_v30 = vadd.f32 %v123_v23, %v2465_v16  ;;  %v193_v56 = vadd.f32 %v192_v50, %v162_v42  ;;  %v170_v23 = vmul.f32 %v2503_v58, %v2503_v58 }
  0x75   :  { %v125_v34 = vadd.f32 %v124_v30, %v2470_v20  ;;  %v194_v61 = vadd.f32 %v193_v56, %v163_v48  ;;  %v2533_v30 = vld [vmem:[#allocation2 + $0xe8] sm:$0xff] }
  0x77   :  { %v126_v40 = vadd.f32 %v125_v34, %v2475_v24  ;;  %v195_v3 = vadd.f32 %v194_v61, %v164_v54 }
  0x79   :  { %v127_v45 = vadd.f32 %v126_v40, %v2483_v35  ;;  %v196_v9 = vadd.f32 %v195_v3, %v165_v60 }
  0x7b   :  { %v128_v52 = vadd.f32 %v127_v45, %v2488_v41  ;;  %v197_v14 = vadd.f32 %v196_v9, %v166_v2  ;;  %v173_v45 = vmul.f32 %v2518_v11, %v2518_v11 }
  0x7d   :  { %v129_v57 = vadd.f32 %v128_v52, %v2493_v46  ;;  %v198_v19 = vadd.f32 %v197_v14, %v167_v7  ;;  %v174_v52 = vmul.f32 %v2523_v17, %v2523_v17 }
  0x7f   :  { %v130_v62 = vadd.f32 %v129_v57, %v2498_v53  ;;  %v199_v25 = vadd.f32 %v198_v19, %v168_v13  ;;  %v175_v57 = vmul.f32 %v2528_v22, %v2528_v22 }
  0x81   :  { %v131_v5 = vadd.f32 %v130_v62, %v2503_v58  ;;  %v200_v33 = vadd.f32 %v199_v25, %v169_v18  ;;  %v176_v62 = vmul.f32 %v2533_v30, %v2533_v30 }
  0x83   :  { %v132_v10 = vadd.f32 %v131_v5, %v2508_v1  ;;  %v201_v40 = vadd.f32 %v200_v33, %v170_v23  ;;  %v177_v5 = vmul.f32 %v2538_v36, %v2538_v36  ;;  %v2120_v33 = vld [vmem:[#allocation8 + $0xc0] sm:$0xff]  }
  0x84   :  { %1946 = vmatprep.subr.bf16.mxu1 %v2120_v33 }
  0x85   :  { %v133_v15 = vadd.f32 %v132_v10, %v2513_v6  ;;  %v202_v48 = vadd.f32 %v201_v40, %v171_v32  ;;  %v178_v10 = vmul.f32 %v2543_v44, %v2543_v44 }
  0x87   :  { %v134_v21 = vadd.f32 %v133_v15, %v2518_v11  ;;  %v203_v54 = vadd.f32 %v202_v48, %v172_v38 }
  0x89   :  { %v135_v26 = vadd.f32 %v134_v21, %v2523_v17  ;;  %v204_v60 = vadd.f32 %v203_v54, %v173_v45 }
  0x8b   :  { %v136_v34 = vadd.f32 %v135_v26, %v2528_v22  ;;  %v205_v2 = vadd.f32 %v204_v60, %v174_v52  ;;  %v2118_v26 = vld [vmem:[#allocation8 + $0x40] sm:$0xff]   ;;  %v104_v60 = vld [vmem:[#allocation5] sm:$0x1] }
  0x8c   :  { %1834 = vmatprep.subr.bf16.mxu0 %v2118_v26 }
  0x8d   :  { %v137_v42 = vadd.f32 %v136_v34, %v2533_v30  ;;  %v206_v7 = vadd.f32 %v205_v2, %v175_v57 }
  0x8f   :  { %v138_v50 = vadd.f32 %v137_v42, %v2538_v36  ;;  %v207_v13 = vadd.f32 %v206_v7, %v176_v62 }
  0x91   :  { %v139_v56 = vadd.f32 %v138_v50, %v2543_v44  ;;  %v208_v15 = vadd.f32 %v207_v13, %v177_v5 }
  0x93   :  { %v140_v61 = vrot.slane %v139_v56, 4  ;;  %v209_v19 = vadd.f32 %v208_v15, %v178_v10 }
  0x95   :  { %v141_v3 = vadd.f32 %v140_v61, %v139_v56  ;;  %v210_v21 = vrot.slane %v209_v19, 4  ;;  %v225_v56 = vlaneseq }
  0x97   :  { %v142_v9 = vrot.slane %v141_v3, 2  ;;  %v211_v25 = vadd.f32 %v210_v21, %v209_v19  ;;  %v2559_v57 = vshrl.u32 %v225_v56, 7 }
  0x99   :  { %v143_v14 = vadd.f32 %v142_v9, %v141_v3  ;;  %v212_v32 = vrot.slane %v211_v25, 2  ;;  %v2562_v61 = vsub.s32 0, %v2559_v57  ;;  %v105_v3 = vld [vmem:[#allocation5 + $0x1] sm:$0x1] }
  0x9b   :  { %v144_v18 = vrot.slane %v143_v14, 1  ;;  %v213_v38 = vadd.f32 %v212_v32, %v211_v25  ;;  %v2119_v25 = vld [vmem:[#allocation8] sm:$0xff]  }
  0x9d   :  { %v145_v23 = vadd.f32 %v144_v18, %v143_v14  ;;  %v214_v40 = vrot.slane %v213_v38, 1 }
  0x9f   :  { %v146_v34 = vmul.f32 0.0052083335, %v145_v23  ;;  %v215_v42 = vadd.f32 %v214_v40, %v213_v38 }
  0xa1   :  { %v217_v45 = vmul.f32 %v146_v34, %v146_v34  ;;  %v216_v48 = vmul.f32 0.0052083335, %v215_v42 }
  0xa3   :  { %v218_v50 = vsub.f32 %v216_v48, %v217_v45  ;;  %v2123_v45 = vld [vmem:[#allocation8 + $0x8] sm:$0xff]  }
  0xa5   :  { %v219_v52 = vmax.f32 %v218_v50, 0.0 }
  0xa7   :  { %v220_v54 = vadd.f32 1e-05, %v219_v52 }
  0xa9   :  { %2150 = vrsqrt.f32 %v220_v54 }
  0xb3   :  { %v2151_v62 = vpop.eup %2150 }
  0xb4   :  { %v222_v2 = vmul.f32 %v2151_v62, %v104_v60 }
  0xb6   :  { %v223_v5 = vmul.f32 %v222_v2, %v146_v34  ;;  %v2565_v7 = vrot.slane %v222_v2, %v2562_v61  ;;  %v2124_v34 = vld [vmem:[#allocation8 + $0xc8] sm:$0xff]  }
  0xb8   :  { %v224_v9 = vsub.f32 %v105_v3, %v223_v5  ;;  %v229_v10 = vmul.f32 %v2565_v7, %v2399_v27  ;;  %v230_v13 = vmul.f32 %v2565_v7, %v2401_v28  ;;  %v231_v15 = vmul.f32 %v2565_v7, %v2403_v29  ;;  %v2121_v29 = vld [vmem:[#allocation8 + $0x80] sm:$0xff]   ;;  %v2126_v5 = vld [vmem:[#allocation8 + $0x50] sm:$0xff]  }
  0xb9   :  { %v232_v18 = vmul.f32 %v2565_v7, %v2407_v31  ;;  %v233_v23 = vmul.f32 %v2565_v7, %v2410_v37  ;;  %v234_v27 = vmul.f32 %v2565_v7, %v2413_v39  ;;  %v2122_v31 = vld [vmem:[#allocation8 + $0x48] sm:$0xff]   ;;  %v2592_v39 = vmul.f32 %v2565_v7, %v2416_v43 }
  0xba   :  { %v2572_v14 = vrot.slane %v224_v9, %v2562_v61  ;;  %v245_v38 = vmul.f32 %v2565_v7, %v2465_v16  ;;  %v246_v40 = vmul.f32 %v2565_v7, %v2470_v20  ;;  %v247_v42 = vmul.f32 %v2565_v7, %v2475_v24  ;;  %v2125_v16 = vld [vmem:[#allocation8 + $0x88] sm:$0xff]  }
  0xbb   :  { %v2602_v50 = vmul.f32 %v2565_v7, %v2423_v47  ;;  %v248_v43 = vmul.f32 %v2565_v7, %v2483_v35  ;;  %v249_v52 = vmul.f32 %v2565_v7, %v2488_v41  ;;  %v250_v56 = vmul.f32 %v2565_v7, %v2493_v46 }
  0xbc   :  { %v265_v19 = vadd.f32 %v2572_v14, %v229_v10  ;;  %v266_v21 = vadd.f32 %v2572_v14, %v230_v13  ;;  %v267_v26 = vadd.f32 %v2572_v14, %v231_v15  ;;  %v268_v32 = vadd.f32 %v2572_v14, %v232_v18  ;;  %v2127_v15 = vld [vmem:[#allocation8 + $0x10] sm:$0xff]  }
  0xbd   :  { %v269_v33 = vadd.f32 %v2572_v14, %v233_v23  ;;  %v270_v37 = vadd.f32 %v2572_v14, %v234_v27  ;;  %v281_v20 = vadd.f32 %v2572_v14, %v245_v38  ;;  %v282_v54 = vadd.f32 %v2572_v14, %v246_v40  ;;  %v2128_v18 = vld [vmem:[#allocation8 + $0xd0] sm:$0xff]   ;;  %v2130_v23 = vld [vmem:[#allocation8 + $0x58] sm:$0xff]  }
  0xbe   :  { %v297_v28 = vpack.c.bf16 %v266_v21, %v265_v19  ;;  %v298_v48 = vpack.c.bf16 %v268_v32, %v267_v26  ;;  %v283_v24 = vadd.f32 %v2572_v14, %v247_v42  ;;  %v284_v60 = vadd.f32 %v2572_v14, %v248_v43  ;;  %v2129_v21 = vld [vmem:[#allocation8 + $0x90] sm:$0xff]   ;;  %v2133_v42 = vld [vmem:[#allocation8 + $0x98] sm:$0xff]   ;;  %v2136_v43 = vld [vmem:[#allocation8 + $0xe0] sm:$0xff]  }
  0xbf   :  { %v299_v47 = vpack.c.bf16 %v270_v37, %v269_v33  ;;  %v285_v35 = vadd.f32 %v2572_v14, %v249_v52  ;;  %v251_v41 = vmul.f32 %v2565_v7, %v2498_v53  ;;  %v2617_v62 = vpack.c.bf16 %v282_v54, %v281_v20  ;;  %v2131_v37 = vld [vmem:[#allocation8 + $0x18] sm:$0xff]   ;;  %v2138_v20 = vld [vmem:[#allocation8 + $0x68] sm:$0xff]   ;;  %v2137_v54 = vld [vmem:[#allocation8 + $0xa0] sm:$0xff]  }
  0xc0   :  { %559 = vmatmul.mubr.bf16.vlgmr.msra.gmra.mrb[0].mxu0 %v297_v28  ;;  %752 = vmatmul.mubr.bf16.vlgmr.msra.gmra.mrb[0].mxu1 %v297_v28  ;;  %v286_v2 = vadd.f32 %v2572_v14, %v250_v56  ;;  %v252_v3 = vmul.f32 %v2565_v7, %v2503_v58  ;;  %v253_v46 = vmul.f32 %v2565_v7, %v2508_v1  ;;  %v2132_v28 = vld [vmem:[#allocation8 + $0xd8] sm:$0xff]   ;;  %v2140_v56 = vld [vmem:[#allocation8 + $0xe8] sm:$0xff]  }
  0xc1   :  { %568 = vmatprep.mubr.bf16.mxu0 %v2312_v0  ;;  %761 = vmatprep.mubr.bf16.mxu1 %v2312_v0  ;;  %v2624_v9 = vpack.c.bf16 %v284_v60, %v283_v24  ;;  %v287_v10 = vadd.f32 %v2572_v14, %v251_v41  ;;  %v254_v53 = vmul.f32 %v2565_v7, %v2513_v6  ;;  %v2139_v24 = vld [vmem:[#allocation8 + $0x28] sm:$0xff]   ;;  %v2143_v41 = vld [vmem:[#allocation8 + $0x30] sm:$0xff]  }
  0xc2   :  { %1835 = vmatpush3.bf16.msra.mxu0 %v2119_v25  ;;  %1947 = vmatpush3.bf16.msra.mxu1 %v2121_v29  ;;  %v255_v13 = vmul.f32 %v2565_v7, %v2518_v11  ;;  %v2631_v58 = vpack.c.bf16 %v286_v2, %v285_v35  ;;  %v288_v1 = vadd.f32 %v2572_v14, %v252_v3  ;;  %v2142_v35 = vld [vmem:[#allocation8 + $0x70] sm:$0xff]  }
  0xc3   :  { %1836 = vmatprep.subr.bf16.mxu0 %v2122_v31  ;;  %1948 = vmatprep.subr.bf16.mxu1 %v2124_v34  ;;  %v289_v19 = vadd.f32 %v2572_v14, %v253_v46  ;;  %v290_v6 = vadd.f32 %v2572_v14, %v254_v53  ;;  %v256_v11 = vmul.f32 %v2565_v7, %v2523_v17  ;;  %v2144_v2 = vld [vmem:[#allocation8 + $0xf0] sm:$0xff]  }
  0xc4   :  { %v291_v27 = vadd.f32 %v2572_v14, %v255_v13  ;;  %v2641_v25 = vpack.c.bf16 %v288_v1, %v287_v10  ;;  %v257_v26 = vmul.f32 %v2565_v7, %v2528_v22  ;;  %v258_v32 = vmul.f32 %v2565_v7, %v2533_v30  ;;  %v2148_v10 = vld [vmem:[#allocation8 + $0xf8] sm:$0xff]  }
  0xc5   :  { %v259_v29 = vmul.f32 %v2565_v7, %v2538_v36  ;;  %v2649_v31 = vpack.c.bf16 %v290_v6, %v289_v19  ;;  %v292_v33 = vadd.f32 %v2572_v14, %v256_v11  ;;  %v260_v17 = vmul.f32 %v2565_v7, %v2543_v44  ;;  %v2134_v44 = vld [vmem:[#allocation8 + $0x60] sm:$0xff]  }
  0xc6   :  { %1837 = vmatpush3.bf16.msra.mxu0 %v2123_v45  ;;  %1949 = vmatpush3.bf16.msra.mxu1 %v2125_v16  ;;  %v293_v34 = vadd.f32 %v2572_v14, %v257_v26  ;;  %v294_v22 = vadd.f32 %v2572_v14, %v258_v32  ;;  %v271_v52 = vadd.f32 %v2572_v14, %v2592_v39 }
  0xc7   :  { %1838 = vmatprep.subr.bf16.mxu0 %v2126_v5  ;;  %1950 = vmatprep.subr.bf16.mxu1 %v2128_v18  ;;  %v295_v30 = vadd.f32 %v2572_v14, %v259_v29  ;;  %v2657_v36 = vpack.c.bf16 %v292_v33, %v291_v27  ;;  %v296_v38 = vadd.f32 %v2572_v14, %v260_v17  ;;  %v2146_v5 = vld [vmem:[#allocation8 + $0x78] sm:$0xff]  }
  0xc8   :  { %569 = vmatmul.mubr.bf16.gmra.mrb[4].mxu0 %v298_v48  ;;  %762 = vmatmul.mubr.bf16.gmra.mrb[4].mxu1 %v298_v48  ;;  %v2660_v40 = vpack.c.bf16 %v294_v22, %v293_v34  ;;  %v2135_v48 = vld [vmem:[#allocation8 + $0x20] sm:$0xff]   ;;  %v272_v16 = vadd.f32 %v2572_v14, %v2602_v50  ;;  %v238_v39 = vmul.f32 %v2565_v7, %v2430_v51  ;;  %v2141_v50 = vld [vmem:[#allocation8 + $0xa8] sm:$0xff]   ;;  %v2147_v51 = vld [vmem:[#allocation8 + $0x38] sm:$0xff]  }
  0xc9   :  { %578 = vmatprep.mubr.bf16.mxu0 %v2312_v0  ;;  %771 = vmatprep.mubr.bf16.mxu1 %v2312_v0  ;;  %v2662_v45 = vpack.c.bf16 %v296_v38, %v295_v30  ;;  %v239_v13 = vmul.f32 %v2565_v7, %v2435_v55  ;;  %v2149_v18 = vld [vmem:[#allocation8 + $0xb8] sm:$0xff]   ;;  %v243_v27 = vmul.f32 %v2565_v7, %v2455_v8  ;;  %v356_v8 = vsub.s32 2, %v2559_v57 }
  0xca   :  { %1839 = vmatpush3.bf16.msra.mxu0 %v2127_v15  ;;  %1951 = vmatpush3.bf16.msra.mxu1 %v2129_v21  ;;  %v300_v60 = vpack.c.bf16 %v272_v16, %v271_v52  ;;  %v274_v46 = vadd.f32 %v2572_v14, %v238_v39  ;;  %v240_v15 = vmul.f32 %v2565_v7, %v2440_v59 }
  0xcb   :  { %1840 = vmatprep.subr.bf16.mxu0 %v2130_v23  ;;  %1952 = vmatprep.subr.bf16.mxu1 %v2132_v28  ;;  %v275_v1 = vadd.f32 %v2572_v14, %v239_v13  ;;  %v241_v59 = vmul.f32 %v2565_v7, %v2445_v63  ;;  %v242_v21 = vmul.f32 %v2565_v7, %v2450_v4 }
  0xcc   :  { %v276_v19 = vadd.f32 %v2572_v14, %v240_v15  ;;  %v244_v63 = vmul.f32 %v2565_v7, %v2460_v12  ;;  %v279_v4 = vadd.f32 %v2572_v14, %v243_v27  ;;  %v107_v12 = vld [vmem:[#allocation5 + $0x2] ss:$4 sm:$0xf] }
  0xcd   :  { %v277_v23 = vadd.f32 %v2572_v14, %v241_v59  ;;  %v278_v6 = vadd.f32 %v2572_v14, %v242_v21 }
  0xce   :  { %1841 = vmatpush3.bf16.msra.mxu0 %v2131_v37  ;;  %1953 = vmatpush3.bf16.msra.mxu1 %v2133_v42  ;;  %v302_v55 = vpack.c.bf16 %v276_v19, %v275_v1  ;;  %v280_v28 = vadd.f32 %v2572_v14, %v244_v63 }
  0xcf   :  { %1842 = vmatprep.subr.bf16.mxu0 %v2134_v44  ;;  %1954 = vmatprep.subr.bf16.mxu1 %v2136_v43  ;;  %v303_v11 = vpack.c.bf16 %v278_v6, %v277_v23 }
  0xd0   :  { %579 = vmatmul.mubr.bf16.gmra.mrb[8].mxu0 %v299_v47  ;;  %772 = vmatmul.mubr.bf16.gmra.mrb[8].mxu1 %v299_v47  ;;  %v237_v47 = vmul.f32 %v2565_v7, %v2427_v49  ;;  %v2145_v49 = vld [vmem:[#allocation8 + $0xb0] sm:$0xff]   ;;  %v304_v26 = vpack.c.bf16 %v280_v28, %v279_v4  ;;  %v352_v7 = vsub.s32 1, %v2559_v57 }
  0xd1   :  { %588 = vmatprep.mubr.bf16.mxu0 %v2312_v0  ;;  %781 = vmatprep.mubr.bf16.mxu1 %v2312_v0 }
  0xd2   :  { %1843 = vmatpush3.bf16.msra.mxu0 %v2135_v48  ;;  %1955 = vmatpush3.bf16.msra.mxu1 %v2137_v54  ;;  %v273_v3 = vadd.f32 %v2572_v14, %v237_v47  ;;  %v360_v14 = vsub.s32 3, %v2559_v57 }
  0xd3   :  { %1844 = vmatprep.subr.bf16.mxu0 %v2138_v20  ;;  %1956 = vmatprep.subr.bf16.mxu1 %v2140_v56 }
  0xd4   :  { %v301_v53 = vpack.c.bf16 %v274_v46, %v273_v3 }
  0xd6   :  { %1845 = vmatpush3.bf16.msra.mxu0 %v2139_v24  ;;  %1957 = vmatpush3.bf16.msra.mxu1 %v2141_v50 }
  0xd7   :  { %1846 = vmatprep.subr.bf16.mxu0 %v2142_v35  ;;  %1958 = vmatprep.subr.bf16.mxu1 %v2144_v2 }
  0xd8   :  { %589 = vmatmul.mubr.bf16.gmra.mrb[12].mxu0 %v300_v60  ;;  %782 = vmatmul.mubr.bf16.gmra.mrb[12].mxu1 %v300_v60 }
  0xd9   :  { %598 = vmatprep.mubr.bf16.mxu0 %v2312_v0  ;;  %791 = vmatprep.mubr.bf16.mxu1 %v2312_v0 }
  0xda   :  { %1847 = vmatpush3.bf16.msra.mxu0 %v2143_v41  ;;  %1959 = vmatpush3.bf16.msra.mxu1 %v2145_v49 }
  0xdb   :  { %1848 = vmatprep.subr.bf16.mxu0 %v2146_v5  ;;  %1960 = vmatprep.subr.bf16.mxu1 %v2148_v10 }
  0xde   :  { %1849 = vmatpush3.bf16.msra.mxu0 %v2147_v51  ;;  %1961 = vmatpush3.bf16.msra.mxu1 %v2149_v18 }
  0xe0   :  { %599 = vmatmul.mubr.bf16.gmra.mrb[16].mxu0 %v301_v53  ;;  %792 = vmatmul.mubr.bf16.gmra.mrb[16].mxu1 %v301_v53 }
  0xe1   :  { %608 = vmatprep.mubr.bf16.mxu0 %v2312_v0  ;;  %801 = vmatprep.mubr.bf16.mxu1 %v2312_v0 }
  0xe8   :  { %609 = vmatmul.mubr.bf16.gmra.mrb[20].mxu0 %v302_v55  ;;  %802 = vmatmul.mubr.bf16.gmra.mrb[20].mxu1 %v302_v55 }
  0xe9   :  { %618 = vmatprep.mubr.bf16.mxu0 %v2312_v0  ;;  %811 = vmatprep.mubr.bf16.mxu1 %v2312_v0 }
  0xf0   :  { %619 = vmatmul.mubr.bf16.gmra.mrb[24].mxu0 %v303_v11  ;;  %812 = vmatmul.mubr.bf16.gmra.mrb[24].mxu1 %v303_v11 }
  0xf1   :  { %628 = vmatprep.mubr.bf16.mxu0 %v2312_v0  ;;  %821 = vmatprep.mubr.bf16.mxu1 %v2312_v0 }
  0xf8   :  { %629 = vmatmul.mubr.bf16.gmra.mrb[28].mxu0 %v304_v26  ;;  %822 = vmatmul.mubr.bf16.gmra.mrb[28].mxu1 %v304_v26 }
  0xf9   :  { %638 = vmatprep.mubr.bf16.mxu0 %v2312_v0  ;;  %831 = vmatprep.mubr.bf16.mxu1 %v2312_v0 }
 0x100   :  { %639 = vmatmul.mubr.bf16.gmra.mrb[32].mxu0 %v2617_v62  ;;  %832 = vmatmul.mubr.bf16.gmra.mrb[32].mxu1 %v2617_v62  ;;  %v2738_v62 = vrot.slane %v107_v12, %v2562_v61 }
 0x101   :  { %648 = vmatprep.mubr.bf16.mxu0 %v2312_v0  ;;  %841 = vmatprep.mubr.bf16.mxu1 %v2312_v0 }
 0x108   :  { %649 = vmatmul.mubr.bf16.gmra.mrb[36].mxu0 %v2624_v9  ;;  %842 = vmatmul.mubr.bf16.gmra.mrb[36].mxu1 %v2624_v9  ;;  %v2740_v9 = vrot.slane %v107_v12, %v356_v8 }
 0x109   :  { %658 = vmatprep.mubr.bf16.mxu0 %v2312_v0  ;;  %851 = vmatprep.mubr.bf16.mxu1 %v2312_v0 }
 0x110   :  { %659 = vmatmul.mubr.bf16.gmra.mrb[40].mxu0 %v2631_v58  ;;  %852 = vmatmul.mubr.bf16.gmra.mrb[40].mxu1 %v2631_v58  ;;  %v2742_v58 = vrot.slane %v107_v12, %v352_v7 }
 0x111   :  { %668 = vmatprep.mubr.bf16.mxu0 %v2312_v0  ;;  %861 = vmatprep.mubr.bf16.mxu1 %v2312_v0 }
 0x118   :  { %669 = vmatmul.mubr.bf16.gmra.mrb[44].mxu0 %v2641_v25  ;;  %862 = vmatmul.mubr.bf16.gmra.mrb[44].mxu1 %v2641_v25  ;;  %v2744_v25 = vrot.slane %v107_v12, %v360_v14 }
 0x119   :  { %678 = vmatprep.mubr.bf16.mxu0 %v2312_v0  ;;  %871 = vmatprep.mubr.bf16.mxu1 %v2312_v0 }
 0x120   :  { %679 = vmatmul.mubr.bf16.gmra.mrb[48].mxu0 %v2649_v31  ;;  %872 = vmatmul.mubr.bf16.gmra.mrb[48].mxu1 %v2649_v31 }
 0x121   :  { %688 = vmatprep.mubr.bf16.mxu0 %v2312_v0  ;;  %881 = vmatprep.mubr.bf16.mxu1 %v2312_v0 }
 0x128   :  { %689 = vmatmul.mubr.bf16.gmra.mrb[52].mxu0 %v2657_v36  ;;  %882 = vmatmul.mubr.bf16.gmra.mrb[52].mxu1 %v2657_v36 }
 0x129   :  { %698 = vmatprep.mubr.bf16.mxu0 %v2312_v0  ;;  %891 = vmatprep.mubr.bf16.mxu1 %v2312_v0 }
 0x130   :  { %699 = vmatmul.mubr.bf16.gmra.mrb[56].mxu0 %v2660_v40  ;;  %892 = vmatmul.mubr.bf16.gmra.mrb[56].mxu1 %v2660_v40 }
 0x131   :  { %708 = vmatprep.mubr.bf16.mxu0 %v2312_v0  ;;  %901 = vmatprep.mubr.bf16.mxu1 %v2312_v0 }
 0x138   :  { %709 = vmatmul.mubr.bf16.gmra.mrb[60].mxu0 %v2662_v45  ;;  %902 = vmatmul.mubr.bf16.gmra.mrb[60].mxu1 %v2662_v45 }
 0x193   :  { %v560_v0 = vpop.f32.mrb[0].mxu0  ;;  %v753_v32 = vpop.f32.mrb[0].mxu1 }
 0x194   :  { %v561_v29 = vadd.f32 %v560_v0, %v2738_v62  ;;  %v754_v31 = vadd.f32 %v753_v32, %v2740_v9  ;;  %v562_v33 = vpop.f32.mrb[1].mxu0  ;;  %v755_v17 = vpop.f32.mrb[1].mxu1 }
 0x195   :  { %v563_v37 = vadd.f32 %v562_v33, %v2742_v58  ;;  %v756_v57 = vadd.f32 %v755_v17, %v2744_v25  ;;  %v564_v61 = vpop.f32.mrb[2].mxu0  ;;  %v757_v34 = vpop.f32.mrb[2].mxu1 }
 0x196   :  { %v914_v22 = vmax.f32 %v754_v31, 0.0  ;;  %v565_v30 = vadd.f32 %v564_v61, %v2738_v62  ;;  %v758_v36 = vadd.f32 %v757_v34, %v2740_v9  ;;  %v566_v38 = vpop.f32.mrb[3].mxu0  ;;  %v759_v40 = vpop.f32.mrb[3].mxu1  ;;  %v912_v48 = vmax.f32 %v561_v29, 0.0 }
 0x197   :  { %v915_v42 = vmax.f32 %v756_v57, 0.0  ;;  %v567_v44 = vadd.f32 %v566_v38, %v2742_v58  ;;  %v760_v45 = vadd.f32 %v759_v40, %v2744_v25  ;;  %v913_v16 = vmax.f32 %v563_v37, 0.0 }
 0x198   :  { %v916_v43 = vmax.f32 %v565_v30, 0.0  ;;  %v918_v52 = vmax.f32 %v758_v36, 0.0 }
 0x199   :  { %v917_v20 = vmax.f32 %v567_v44, 0.0  ;;  %v919_v54 = vmax.f32 %v760_v45, 0.0 }
 0x19a   :  { %v1040_v24 = vpack.c.bf16 %v916_v43, %v912_v48  ;;  %v1042_v56 = vpack.c.bf16 %v918_v52, %v914_v22 }
 0x19b   :  { %v1041_v60 = vpack.c.bf16 %v917_v20, %v913_v16  ;;  %v1043_v47 = vpack.c.bf16 %v919_v54, %v915_v42  ;;  %v570_v39 = vpop.f32.mrb[4].mxu0  ;;  %v763_v50 = vpop.f32.mrb[4].mxu1 }
 0x19c   :  { %v571_v35 = vadd.f32 %v570_v39, %v2738_v62  ;;  %v764_v41 = vadd.f32 %v763_v50, %v2740_v9  ;;  %v572_v2 = vpop.f32.mrb[5].mxu0  ;;  %v765_v3 = vpop.f32.mrb[5].mxu1 }
 0x19d   :  { %v573_v46 = vadd.f32 %v572_v2, %v2742_v58  ;;  %v766_v5 = vadd.f32 %v765_v3, %v2744_v25  ;;  %v574_v49 = vpop.f32.mrb[6].mxu0  ;;  %v767_v51 = vpop.f32.mrb[6].mxu1  ;;  %1396 = vmatprep.mubr.bf16.mxu0 %v1041_v60  ;;  %1557 = vmatprep.mubr.bf16.mxu1 %v1043_v47 }
 0x19e   :  { %v922_v10 = vmax.f32 %v764_v41, 0.0  ;;  %v575_v53 = vadd.f32 %v574_v49, %v2738_v62  ;;  %v768_v13 = vadd.f32 %v767_v51, %v2740_v9  ;;  %v576_v15 = vpop.f32.mrb[7].mxu0  ;;  %v769_v18 = vpop.f32.mrb[7].mxu1  ;;  %1397 = vmatmul.mubr.bf16.vlgmr.msra.gmra.mrb[64].mxu0 %v1040_v24  ;;  %1558 = vmatmul.mubr.bf16.vlgmr.msra.gmra.mrb[64].mxu1 %v1042_v56  ;;  %v920_v59 = vmax.f32 %v571_v35, 0.0 }
 0x19f   :  { %v923_v1 = vmax.f32 %v766_v5, 0.0  ;;  %v577_v19 = vadd.f32 %v576_v15, %v2742_v58  ;;  %v770_v55 = vadd.f32 %v769_v18, %v2744_v25  ;;  %v921_v6 = vmax.f32 %v573_v46, 0.0 }
 0x1a0   :  { %v924_v21 = vmax.f32 %v575_v53, 0.0  ;;  %v926_v23 = vmax.f32 %v768_v13, 0.0 }
 0x1a1   :  { %v925_v11 = vmax.f32 %v577_v19, 0.0  ;;  %v927_v27 = vmax.f32 %v770_v55, 0.0 }
 0x1a2   :  { %v1044_v63 = vpack.c.bf16 %v924_v21, %v920_v59  ;;  %v1046_v4 = vpack.c.bf16 %v926_v23, %v922_v10 }
 0x1a3   :  { %v1045_v28 = vpack.c.bf16 %v925_v11, %v921_v6  ;;  %v1047_v26 = vpack.c.bf16 %v927_v27, %v923_v1  ;;  %v580_v8 = vpop.f32.mrb[8].mxu0  ;;  %v773_v12 = vpop.f32.mrb[8].mxu1 }
 0x1a4   :  { %v581_v7 = vadd.f32 %v580_v8, %v2738_v62  ;;  %v774_v14 = vadd.f32 %v773_v12, %v2740_v9  ;;  %v582_v0 = vpop.f32.mrb[9].mxu0  ;;  %v775_v32 = vpop.f32.mrb[9].mxu1 }
 0x1a5   :  { %v583_v29 = vadd.f32 %v582_v0, %v2742_v58  ;;  %v776_v31 = vadd.f32 %v775_v32, %v2744_v25  ;;  %v584_v33 = vpop.f32.mrb[10].mxu0  ;;  %v777_v17 = vpop.f32.mrb[10].mxu1  ;;  %1404 = vmatprep.mubr.bf16.mxu0 %v1045_v28  ;;  %1565 = vmatprep.mubr.bf16.mxu1 %v1047_v26 }
 0x1a6   :  { %v930_v37 = vmax.f32 %v774_v14, 0.0  ;;  %v585_v57 = vadd.f32 %v584_v33, %v2738_v62  ;;  %v778_v61 = vadd.f32 %v777_v17, %v2740_v9  ;;  %v586_v34 = vpop.f32.mrb[11].mxu0  ;;  %v779_v22 = vpop.f32.mrb[11].mxu1  ;;  %1405 = vmatmul.mubr.bf16.gmra.mrb[68].mxu0 %v1044_v63  ;;  %1566 = vmatmul.mubr.bf16.gmra.mrb[68].mxu1 %v1046_v4  ;;  %v928_v40 = vmax.f32 %v581_v7, 0.0 }
 0x1a7   :  { %v931_v30 = vmax.f32 %v776_v31, 0.0  ;;  %v587_v36 = vadd.f32 %v586_v34, %v2742_v58  ;;  %v780_v38 = vadd.f32 %v779_v22, %v2744_v25  ;;  %v929_v45 = vmax.f32 %v583_v29, 0.0 }
 0x1a8   :  { %v932_v42 = vmax.f32 %v585_v57, 0.0  ;;  %v934_v44 = vmax.f32 %v778_v61, 0.0 }
 0x1a9   :  { %v933_v48 = vmax.f32 %v587_v36, 0.0  ;;  %v935_v43 = vmax.f32 %v780_v38, 0.0 }
 0x1aa   :  { %v1048_v52 = vpack.c.bf16 %v932_v42, %v928_v40  ;;  %v1050_v16 = vpack.c.bf16 %v934_v44, %v930_v37 }
 0x1ab   :  { %v1049_v20 = vpack.c.bf16 %v933_v48, %v929_v45  ;;  %v1051_v54 = vpack.c.bf16 %v935_v43, %v931_v30  ;;  %v590_v24 = vpop.f32.mrb[12].mxu0  ;;  %v783_v56 = vpop.f32.mrb[12].mxu1 }
 0x1ac   :  { %v591_v60 = vadd.f32 %v590_v24, %v2738_v62  ;;  %v784_v47 = vadd.f32 %v783_v56, %v2740_v9  ;;  %v592_v39 = vpop.f32.mrb[13].mxu0  ;;  %v785_v50 = vpop.f32.mrb[13].mxu1 }
 0x1ad   :  { %v593_v35 = vadd.f32 %v592_v39, %v2742_v58  ;;  %v786_v41 = vadd.f32 %v785_v50, %v2744_v25  ;;  %v594_v2 = vpop.f32.mrb[14].mxu0  ;;  %v787_v3 = vpop.f32.mrb[14].mxu1  ;;  %1412 = vmatprep.mubr.bf16.mxu0 %v1049_v20  ;;  %1573 = vmatprep.mubr.bf16.mxu1 %v1051_v54 }
 0x1ae   :  { %v938_v46 = vmax.f32 %v784_v47, 0.0  ;;  %v595_v5 = vadd.f32 %v594_v2, %v2738_v62  ;;  %v788_v49 = vadd.f32 %v787_v3, %v2740_v9  ;;  %v596_v51 = vpop.f32.mrb[15].mxu0  ;;  %v789_v10 = vpop.f32.mrb[15].mxu1  ;;  %1413 = vmatmul.mubr.bf16.gmra.mrb[72].mxu0 %v1048_v52  ;;  %1574 = vmatmul.mubr.bf16.gmra.mrb[72].mxu1 %v1050_v16  ;;  %v936_v18 = vmax.f32 %v591_v60, 0.0 }
 0x1af   :  { %v939_v53 = vmax.f32 %v786_v41, 0.0  ;;  %v597_v13 = vadd.f32 %v596_v51, %v2742_v58  ;;  %v790_v15 = vadd.f32 %v789_v10, %v2744_v25  ;;  %v937_v55 = vmax.f32 %v593_v35, 0.0 }
 0x1b0   :  { %v940_v1 = vmax.f32 %v595_v5, 0.0  ;;  %v942_v19 = vmax.f32 %v788_v49, 0.0 }
 0x1b1   :  { %v941_v59 = vmax.f32 %v597_v13, 0.0  ;;  %v943_v21 = vmax.f32 %v790_v15, 0.0 }
 0x1b2   :  { %v1052_v23 = vpack.c.bf16 %v940_v1, %v936_v18  ;;  %v1054_v6 = vpack.c.bf16 %v942_v19, %v938_v46 }
 0x1b3   :  { %v1053_v11 = vpack.c.bf16 %v941_v59, %v937_v55  ;;  %v1055_v27 = vpack.c.bf16 %v943_v21, %v939_v53  ;;  %v600_v63 = vpop.f32.mrb[16].mxu0  ;;  %v793_v4 = vpop.f32.mrb[16].mxu1 }
 0x1b4   :  { %v601_v28 = vadd.f32 %v600_v63, %v2738_v62  ;;  %v794_v26 = vadd.f32 %v793_v4, %v2740_v9  ;;  %v602_v8 = vpop.f32.mrb[17].mxu0  ;;  %v795_v12 = vpop.f32.mrb[17].mxu1 }
 0x1b5   :  { %v603_v7 = vadd.f32 %v602_v8, %v2742_v58  ;;  %v796_v14 = vadd.f32 %v795_v12, %v2744_v25  ;;  %v604_v0 = vpop.f32.mrb[18].mxu0  ;;  %v797_v32 = vpop.f32.mrb[18].mxu1  ;;  %1420 = vmatprep.mubr.bf16.mxu0 %v1053_v11  ;;  %1581 = vmatprep.mubr.bf16.mxu1 %v1055_v27 }
 0x1b6   :  { %v946_v29 = vmax.f32 %v794_v26, 0.0  ;;  %v605_v31 = vadd.f32 %v604_v0, %v2738_v62  ;;  %v798_v33 = vadd.f32 %v797_v32, %v2740_v9  ;;  %v606_v17 = vpop.f32.mrb[19].mxu0  ;;  %v799_v37 = vpop.f32.mrb[19].mxu1  ;;  %1421 = vmatmul.mubr.bf16.gmra.mrb[76].mxu0 %v1052_v23  ;;  %1582 = vmatmul.mubr.bf16.gmra.mrb[76].mxu1 %v1054_v6  ;;  %v944_v22 = vmax.f32 %v601_v28, 0.0 }
 0x1b7   :  { %v947_v57 = vmax.f32 %v796_v14, 0.0  ;;  %v607_v61 = vadd.f32 %v606_v17, %v2742_v58  ;;  %v800_v34 = vadd.f32 %v799_v37, %v2744_v25  ;;  %v945_v38 = vmax.f32 %v603_v7, 0.0 }
 0x1b8   :  { %v948_v30 = vmax.f32 %v605_v31, 0.0  ;;  %v950_v36 = vmax.f32 %v798_v33, 0.0 }
 0x1b9   :  { %v949_v40 = vmax.f32 %v607_v61, 0.0  ;;  %v951_v42 = vmax.f32 %v800_v34, 0.0 }
 0x1ba   :  { %v1056_v44 = vpack.c.bf16 %v948_v30, %v944_v22  ;;  %v1058_v45 = vpack.c.bf16 %v950_v36, %v946_v29 }
 0x1bb   :  { %v1057_v48 = vpack.c.bf16 %v949_v40, %v945_v38  ;;  %v1059_v43 = vpack.c.bf16 %v951_v42, %v947_v57  ;;  %v610_v52 = vpop.f32.mrb[20].mxu0  ;;  %v803_v16 = vpop.f32.mrb[20].mxu1 }
 0x1bc   :  { %v611_v20 = vadd.f32 %v610_v52, %v2738_v62  ;;  %v804_v54 = vadd.f32 %v803_v16, %v2740_v9  ;;  %v612_v24 = vpop.f32.mrb[21].mxu0  ;;  %v805_v56 = vpop.f32.mrb[21].mxu1 }
 0x1bd   :  { %v613_v60 = vadd.f32 %v612_v24, %v2742_v58  ;;  %v806_v47 = vadd.f32 %v805_v56, %v2744_v25  ;;  %v614_v39 = vpop.f32.mrb[22].mxu0  ;;  %v807_v50 = vpop.f32.mrb[22].mxu1  ;;  %1428 = vmatprep.mubr.bf16.mxu0 %v1057_v48  ;;  %1589 = vmatprep.mubr.bf16.mxu1 %v1059_v43 }
 0x1be   :  { %v954_v35 = vmax.f32 %v804_v54, 0.0  ;;  %v615_v41 = vadd.f32 %v614_v39, %v2738_v62  ;;  %v808_v2 = vadd.f32 %v807_v50, %v2740_v9  ;;  %v616_v3 = vpop.f32.mrb[23].mxu0  ;;  %v809_v46 = vpop.f32.mrb[23].mxu1  ;;  %1429 = vmatmul.mubr.bf16.gmra.mrb[80].mxu0 %v1056_v44  ;;  %1590 = vmatmul.mubr.bf16.gmra.mrb[80].mxu1 %v1058_v45  ;;  %v952_v10 = vmax.f32 %v611_v20, 0.0 }
 0x1bf   :  { %v955_v5 = vmax.f32 %v806_v47, 0.0  ;;  %v617_v49 = vadd.f32 %v616_v3, %v2742_v58  ;;  %v810_v51 = vadd.f32 %v809_v46, %v2744_v25  ;;  %v953_v15 = vmax.f32 %v613_v60, 0.0 }
 0x1c0   :  { %v956_v53 = vmax.f32 %v615_v41, 0.0  ;;  %v958_v13 = vmax.f32 %v808_v2, 0.0 }
 0x1c1   :  { %v957_v18 = vmax.f32 %v617_v49, 0.0  ;;  %v959_v1 = vmax.f32 %v810_v51, 0.0 }
 0x1c2   :  { %v1060_v19 = vpack.c.bf16 %v956_v53, %v952_v10  ;;  %v1062_v55 = vpack.c.bf16 %v958_v13, %v954_v35 }
 0x1c3   :  { %v1061_v59 = vpack.c.bf16 %v957_v18, %v953_v15  ;;  %v1063_v21 = vpack.c.bf16 %v959_v1, %v955_v5  ;;  %v620_v23 = vpop.f32.mrb[24].mxu0  ;;  %v813_v6 = vpop.f32.mrb[24].mxu1 }
 0x1c4   :  { %v621_v11 = vadd.f32 %v620_v23, %v2738_v62  ;;  %v814_v27 = vadd.f32 %v813_v6, %v2740_v9  ;;  %v622_v63 = vpop.f32.mrb[25].mxu0  ;;  %v815_v4 = vpop.f32.mrb[25].mxu1 }
 0x1c5   :  { %v623_v28 = vadd.f32 %v622_v63, %v2742_v58  ;;  %v816_v26 = vadd.f32 %v815_v4, %v2744_v25  ;;  %v624_v8 = vpop.f32.mrb[26].mxu0  ;;  %v817_v12 = vpop.f32.mrb[26].mxu1  ;;  %1436 = vmatprep.mubr.bf16.mxu0 %v1061_v59  ;;  %1597 = vmatprep.mubr.bf16.mxu1 %v1063_v21 }
 0x1c6   :  { %v962_v7 = vmax.f32 %v814_v27, 0.0  ;;  %v625_v14 = vadd.f32 %v624_v8, %v2738_v62  ;;  %v818_v0 = vadd.f32 %v817_v12, %v2740_v9  ;;  %v626_v32 = vpop.f32.mrb[27].mxu0  ;;  %v819_v29 = vpop.f32.mrb[27].mxu1  ;;  %1437 = vmatmul.mubr.bf16.gmra.mrb[84].mxu0 %v1060_v19  ;;  %1598 = vmatmul.mubr.bf16.gmra.mrb[84].mxu1 %v1062_v55  ;;  %v960_v37 = vmax.f32 %v621_v11, 0.0 }
 0x1c7   :  { %v963_v31 = vmax.f32 %v816_v26, 0.0  ;;  %v627_v33 = vadd.f32 %v626_v32, %v2742_v58  ;;  %v820_v17 = vadd.f32 %v819_v29, %v2744_v25  ;;  %v961_v34 = vmax.f32 %v623_v28, 0.0 }
 0x1c8   :  { %v964_v57 = vmax.f32 %v625_v14, 0.0  ;;  %v966_v61 = vmax.f32 %v818_v0, 0.0 }
 0x1c9   :  { %v965_v22 = vmax.f32 %v627_v33, 0.0  ;;  %v967_v30 = vmax.f32 %v820_v17, 0.0 }
 0x1ca   :  { %v1064_v36 = vpack.c.bf16 %v964_v57, %v960_v37  ;;  %v1066_v38 = vpack.c.bf16 %v966_v61, %v962_v7 }
 0x1cb   :  { %v1065_v40 = vpack.c.bf16 %v965_v22, %v961_v34  ;;  %v1067_v42 = vpack.c.bf16 %v967_v30, %v963_v31  ;;  %v630_v44 = vpop.f32.mrb[28].mxu0  ;;  %v823_v45 = vpop.f32.mrb[28].mxu1 }
 0x1cc   :  { %v631_v48 = vadd.f32 %v630_v44, %v2738_v62  ;;  %v824_v43 = vadd.f32 %v823_v45, %v2740_v9  ;;  %v632_v52 = vpop.f32.mrb[29].mxu0  ;;  %v825_v16 = vpop.f32.mrb[29].mxu1 }
 0x1cd   :  { %v633_v20 = vadd.f32 %v632_v52, %v2742_v58  ;;  %v826_v54 = vadd.f32 %v825_v16, %v2744_v25  ;;  %v634_v24 = vpop.f32.mrb[30].mxu0  ;;  %v827_v56 = vpop.f32.mrb[30].mxu1  ;;  %1444 = vmatprep.mubr.bf16.mxu0 %v1065_v40  ;;  %1605 = vmatprep.mubr.bf16.mxu1 %v1067_v42 }
 0x1ce   :  { %v970_v60 = vmax.f32 %v824_v43, 0.0  ;;  %v635_v47 = vadd.f32 %v634_v24, %v2738_v62  ;;  %v828_v39 = vadd.f32 %v827_v56, %v2740_v9  ;;  %v636_v50 = vpop.f32.mrb[31].mxu0  ;;  %v829_v35 = vpop.f32.mrb[31].mxu1  ;;  %1445 = vmatmul.mubr.bf16.gmra.mrb[88].mxu0 %v1064_v36  ;;  %1606 = vmatmul.mubr.bf16.gmra.mrb[88].mxu1 %v1066_v38  ;;  %v968_v46 = vmax.f32 %v631_v48, 0.0 }
 0x1cf   :  { %v971_v41 = vmax.f32 %v826_v54, 0.0  ;;  %v637_v2 = vadd.f32 %v636_v50, %v2742_v58  ;;  %v830_v3 = vadd.f32 %v829_v35, %v2744_v25  ;;  %v969_v51 = vmax.f32 %v633_v20, 0.0 }
 0x1d0   :  { %v972_v5 = vmax.f32 %v635_v47, 0.0  ;;  %v974_v49 = vmax.f32 %v828_v39, 0.0 }
 0x1d1   :  { %v973_v10 = vmax.f32 %v637_v2, 0.0  ;;  %v975_v53 = vmax.f32 %v830_v3, 0.0 }
 0x1d2   :  { %v1068_v13 = vpack.c.bf16 %v972_v5, %v968_v46  ;;  %v1070_v15 = vpack.c.bf16 %v974_v49, %v970_v60 }
 0x1d3   :  { %v1069_v18 = vpack.c.bf16 %v973_v10, %v969_v51  ;;  %v1071_v1 = vpack.c.bf16 %v975_v53, %v971_v41  ;;  %v640_v19 = vpop.f32.mrb[32].mxu0  ;;  %v833_v55 = vpop.f32.mrb[32].mxu1 }
 0x1d4   :  { %v641_v59 = vadd.f32 %v640_v19, %v2738_v62  ;;  %v834_v21 = vadd.f32 %v833_v55, %v2740_v9  ;;  %v642_v23 = vpop.f32.mrb[33].mxu0  ;;  %v835_v6 = vpop.f32.mrb[33].mxu1 }
 0x1d5   :  { %v643_v11 = vadd.f32 %v642_v23, %v2742_v58  ;;  %v836_v27 = vadd.f32 %v835_v6, %v2744_v25  ;;  %v644_v63 = vpop.f32.mrb[34].mxu0  ;;  %v837_v4 = vpop.f32.mrb[34].mxu1  ;;  %1452 = vmatprep.mubr.bf16.mxu0 %v1069_v18  ;;  %1613 = vmatprep.mubr.bf16.mxu1 %v1071_v1 }
 0x1d6   :  { %v978_v28 = vmax.f32 %v834_v21, 0.0  ;;  %v645_v26 = vadd.f32 %v644_v63, %v2738_v62  ;;  %v838_v8 = vadd.f32 %v837_v4, %v2740_v9  ;;  %v646_v12 = vpop.f32.mrb[35].mxu0  ;;  %v839_v7 = vpop.f32.mrb[35].mxu1  ;;  %1453 = vmatmul.mubr.bf16.gmra.mrb[92].mxu0 %v1068_v13  ;;  %1614 = vmatmul.mubr.bf16.gmra.mrb[92].mxu1 %v1070_v15  ;;  %v976_v29 = vmax.f32 %v641_v59, 0.0 }
 0x1d7   :  { %v979_v14 = vmax.f32 %v836_v27, 0.0  ;;  %v647_v0 = vadd.f32 %v646_v12, %v2742_v58  ;;  %v840_v32 = vadd.f32 %v839_v7, %v2744_v25  ;;  %v977_v17 = vmax.f32 %v643_v11, 0.0 }
 0x1d8   :  { %v980_v31 = vmax.f32 %v645_v26, 0.0  ;;  %v982_v33 = vmax.f32 %v838_v8, 0.0 }
 0x1d9   :  { %v981_v37 = vmax.f32 %v647_v0, 0.0  ;;  %v983_v57 = vmax.f32 %v840_v32, 0.0 }
 0x1da   :  { %v1072_v61 = vpack.c.bf16 %v980_v31, %v976_v29  ;;  %v1074_v34 = vpack.c.bf16 %v982_v33, %v978_v28 }
 0x1db   :  { %v1073_v22 = vpack.c.bf16 %v981_v37, %v977_v17  ;;  %v1075_v30 = vpack.c.bf16 %v983_v57, %v979_v14  ;;  %v650_v36 = vpop.f32.mrb[36].mxu0  ;;  %v843_v38 = vpop.f32.mrb[36].mxu1 }
 0x1dc   :  { %v651_v40 = vadd.f32 %v650_v36, %v2738_v62  ;;  %v844_v42 = vadd.f32 %v843_v38, %v2740_v9  ;;  %v652_v44 = vpop.f32.mrb[37].mxu0  ;;  %v845_v45 = vpop.f32.mrb[37].mxu1 }
 0x1dd   :  { %v653_v48 = vadd.f32 %v652_v44, %v2742_v58  ;;  %v846_v43 = vadd.f32 %v845_v45, %v2744_v25  ;;  %v654_v52 = vpop.f32.mrb[38].mxu0  ;;  %v847_v16 = vpop.f32.mrb[38].mxu1  ;;  %1460 = vmatprep.mubr.bf16.mxu0 %v1073_v22  ;;  %1621 = vmatprep.mubr.bf16.mxu1 %v1075_v30 }
 0x1de   :  { %v986_v20 = vmax.f32 %v844_v42, 0.0  ;;  %v655_v54 = vadd.f32 %v654_v52, %v2738_v62  ;;  %v848_v24 = vadd.f32 %v847_v16, %v2740_v9  ;;  %v656_v56 = vpop.f32.mrb[39].mxu0  ;;  %v849_v60 = vpop.f32.mrb[39].mxu1  ;;  %1461 = vmatmul.mubr.bf16.gmra.mrb[96].mxu0 %v1072_v61  ;;  %1622 = vmatmul.mubr.bf16.gmra.mrb[96].mxu1 %v1074_v34  ;;  %v984_v35 = vmax.f32 %v651_v40, 0.0 }
 0x1df   :  { %v987_v47 = vmax.f32 %v846_v43, 0.0  ;;  %v657_v39 = vadd.f32 %v656_v56, %v2742_v58  ;;  %v850_v50 = vadd.f32 %v849_v60, %v2744_v25  ;;  %v985_v3 = vmax.f32 %v653_v48, 0.0 }
 0x1e0   :  { %v988_v41 = vmax.f32 %v655_v54, 0.0  ;;  %v990_v2 = vmax.f32 %v848_v24, 0.0 }
 0x1e1   :  { %v989_v46 = vmax.f32 %v657_v39, 0.0  ;;  %v991_v5 = vmax.f32 %v850_v50, 0.0 }
 0x1e2   :  { %v1076_v49 = vpack.c.bf16 %v988_v41, %v984_v35  ;;  %v1078_v51 = vpack.c.bf16 %v990_v2, %v986_v20 }
 0x1e3   :  { %v1077_v10 = vpack.c.bf16 %v989_v46, %v985_v3  ;;  %v1079_v53 = vpack.c.bf16 %v991_v5, %v987_v47  ;;  %v660_v13 = vpop.f32.mrb[40].mxu0  ;;  %v853_v15 = vpop.f32.mrb[40].mxu1 }
 0x1e4   :  { %v661_v18 = vadd.f32 %v660_v13, %v2738_v62  ;;  %v854_v1 = vadd.f32 %v853_v15, %v2740_v9  ;;  %v662_v19 = vpop.f32.mrb[41].mxu0  ;;  %v855_v55 = vpop.f32.mrb[41].mxu1 }
 0x1e5   :  { %v663_v59 = vadd.f32 %v662_v19, %v2742_v58  ;;  %v856_v21 = vadd.f32 %v855_v55, %v2744_v25  ;;  %v664_v23 = vpop.f32.mrb[42].mxu0  ;;  %v857_v6 = vpop.f32.mrb[42].mxu1  ;;  %1468 = vmatprep.mubr.bf16.mxu0 %v1077_v10  ;;  %1629 = vmatprep.mubr.bf16.mxu1 %v1079_v53 }
 0x1e6   :  { %v994_v11 = vmax.f32 %v854_v1, 0.0  ;;  %v665_v27 = vadd.f32 %v664_v23, %v2738_v62  ;;  %v858_v63 = vadd.f32 %v857_v6, %v2740_v9  ;;  %v666_v4 = vpop.f32.mrb[43].mxu0  ;;  %v859_v28 = vpop.f32.mrb[43].mxu1  ;;  %1469 = vmatmul.mubr.bf16.gmra.mrb[100].mxu0 %v1076_v49  ;;  %1630 = vmatmul.mubr.bf16.gmra.mrb[100].mxu1 %v1078_v51  ;;  %v992_v7 = vmax.f32 %v661_v18, 0.0 }
 0x1e7   :  { %v995_v26 = vmax.f32 %v856_v21, 0.0  ;;  %v667_v8 = vadd.f32 %v666_v4, %v2742_v58  ;;  %v860_v12 = vadd.f32 %v859_v28, %v2744_v25  ;;  %v993_v32 = vmax.f32 %v663_v59, 0.0 }
 0x1e8   :  { %v996_v14 = vmax.f32 %v665_v27, 0.0  ;;  %v998_v0 = vmax.f32 %v858_v63, 0.0 }
 0x1e9   :  { %v997_v29 = vmax.f32 %v667_v8, 0.0  ;;  %v999_v31 = vmax.f32 %v860_v12, 0.0 }
 0x1ea   :  { %v1080_v33 = vpack.c.bf16 %v996_v14, %v992_v7  ;;  %v1082_v17 = vpack.c.bf16 %v998_v0, %v994_v11 }
 0x1eb   :  { %v1081_v37 = vpack.c.bf16 %v997_v29, %v993_v32  ;;  %v1083_v57 = vpack.c.bf16 %v999_v31, %v995_v26  ;;  %v670_v61 = vpop.f32.mrb[44].mxu0  ;;  %v863_v34 = vpop.f32.mrb[44].mxu1 }
 0x1ec   :  { %v671_v22 = vadd.f32 %v670_v61, %v2738_v62  ;;  %v864_v30 = vadd.f32 %v863_v34, %v2740_v9  ;;  %v672_v36 = vpop.f32.mrb[45].mxu0  ;;  %v865_v38 = vpop.f32.mrb[45].mxu1 }
 0x1ed   :  { %v673_v40 = vadd.f32 %v672_v36, %v2742_v58  ;;  %v866_v42 = vadd.f32 %v865_v38, %v2744_v25  ;;  %v674_v44 = vpop.f32.mrb[46].mxu0  ;;  %v867_v45 = vpop.f32.mrb[46].mxu1  ;;  %1476 = vmatprep.mubr.bf16.mxu0 %v1081_v37  ;;  %1637 = vmatprep.mubr.bf16.mxu1 %v1083_v57 }
 0x1ee   :  { %v1002_v48 = vmax.f32 %v864_v30, 0.0  ;;  %v675_v43 = vadd.f32 %v674_v44, %v2738_v62  ;;  %v868_v52 = vadd.f32 %v867_v45, %v2740_v9  ;;  %v676_v16 = vpop.f32.mrb[47].mxu0  ;;  %v869_v20 = vpop.f32.mrb[47].mxu1  ;;  %1477 = vmatmul.mubr.bf16.gmra.mrb[104].mxu0 %v1080_v33  ;;  %1638 = vmatmul.mubr.bf16.gmra.mrb[104].mxu1 %v1082_v17  ;;  %v1000_v60 = vmax.f32 %v671_v22, 0.0 }
 0x1ef   :  { %v1003_v54 = vmax.f32 %v866_v42, 0.0  ;;  %v677_v24 = vadd.f32 %v676_v16, %v2742_v58  ;;  %v870_v56 = vadd.f32 %v869_v20, %v2744_v25  ;;  %v1001_v50 = vmax.f32 %v673_v40, 0.0 }
 0x1f0   :  { %v1004_v47 = vmax.f32 %v675_v43, 0.0  ;;  %v1006_v39 = vmax.f32 %v868_v52, 0.0 }
 0x1f1   :  { %v1005_v35 = vmax.f32 %v677_v24, 0.0  ;;  %v1007_v41 = vmax.f32 %v870_v56, 0.0 }
 0x1f2   :  { %v1084_v2 = vpack.c.bf16 %v1004_v47, %v1000_v60  ;;  %v1086_v3 = vpack.c.bf16 %v1006_v39, %v1002_v48 }
 0x1f3   :  { %v1085_v46 = vpack.c.bf16 %v1005_v35, %v1001_v50  ;;  %v1087_v5 = vpack.c.bf16 %v1007_v41, %v1003_v54  ;;  %v680_v49 = vpop.f32.mrb[48].mxu0  ;;  %v873_v51 = vpop.f32.mrb[48].mxu1 }
 0x1f4   :  { %v681_v10 = vadd.f32 %v680_v49, %v2738_v62  ;;  %v874_v53 = vadd.f32 %v873_v51, %v2740_v9  ;;  %v682_v13 = vpop.f32.mrb[49].mxu0  ;;  %v875_v15 = vpop.f32.mrb[49].mxu1 }
 0x1f5   :  { %v683_v18 = vadd.f32 %v682_v13, %v2742_v58  ;;  %v876_v1 = vadd.f32 %v875_v15, %v2744_v25  ;;  %v684_v19 = vpop.f32.mrb[50].mxu0  ;;  %v877_v55 = vpop.f32.mrb[50].mxu1  ;;  %1484 = vmatprep.mubr.bf16.mxu0 %v1085_v46  ;;  %1645 = vmatprep.mubr.bf16.mxu1 %v1087_v5 }
 0x1f6   :  { %v1010_v59 = vmax.f32 %v874_v53, 0.0  ;;  %v685_v21 = vadd.f32 %v684_v19, %v2738_v62  ;;  %v878_v23 = vadd.f32 %v877_v55, %v2740_v9  ;;  %v686_v6 = vpop.f32.mrb[51].mxu0  ;;  %v879_v11 = vpop.f32.mrb[51].mxu1  ;;  %1485 = vmatmul.mubr.bf16.gmra.mrb[108].mxu0 %v1084_v2  ;;  %1646 = vmatmul.mubr.bf16.gmra.mrb[108].mxu1 %v1086_v3  ;;  %v1008_v28 = vmax.f32 %v681_v10, 0.0 }
 0x1f7   :  { %v1011_v27 = vmax.f32 %v876_v1, 0.0  ;;  %v687_v63 = vadd.f32 %v686_v6, %v2742_v58  ;;  %v880_v4 = vadd.f32 %v879_v11, %v2744_v25  ;;  %v1009_v12 = vmax.f32 %v683_v18, 0.0 }
 0x1f8   :  { %v1012_v26 = vmax.f32 %v685_v21, 0.0  ;;  %v1014_v8 = vmax.f32 %v878_v23, 0.0 }
 0x1f9   :  { %v1013_v7 = vmax.f32 %v687_v63, 0.0  ;;  %v1015_v14 = vmax.f32 %v880_v4, 0.0 }
 0x1fa   :  { %v1088_v0 = vpack.c.bf16 %v1012_v26, %v1008_v28  ;;  %v1090_v32 = vpack.c.bf16 %v1014_v8, %v1010_v59 }
 0x1fb   :  { %v1089_v29 = vpack.c.bf16 %v1013_v7, %v1009_v12  ;;  %v1091_v31 = vpack.c.bf16 %v1015_v14, %v1011_v27  ;;  %v690_v33 = vpop.f32.mrb[52].mxu0  ;;  %v883_v17 = vpop.f32.mrb[52].mxu1 }
 0x1fc   :  { %v691_v37 = vadd.f32 %v690_v33, %v2738_v62  ;;  %v884_v57 = vadd.f32 %v883_v17, %v2740_v9  ;;  %v692_v61 = vpop.f32.mrb[53].mxu0  ;;  %v885_v34 = vpop.f32.mrb[53].mxu1 }
 0x1fd   :  { %v693_v22 = vadd.f32 %v692_v61, %v2742_v58  ;;  %v886_v30 = vadd.f32 %v885_v34, %v2744_v25  ;;  %v694_v36 = vpop.f32.mrb[54].mxu0  ;;  %v887_v38 = vpop.f32.mrb[54].mxu1  ;;  %1492 = vmatprep.mubr.bf16.mxu0 %v1089_v29  ;;  %1653 = vmatprep.mubr.bf16.mxu1 %v1091_v31 }
 0x1fe   :  { %v1018_v40 = vmax.f32 %v884_v57, 0.0  ;;  %v695_v42 = vadd.f32 %v694_v36, %v2738_v62  ;;  %v888_v44 = vadd.f32 %v887_v38, %v2740_v9  ;;  %v696_v45 = vpop.f32.mrb[55].mxu0  ;;  %v889_v48 = vpop.f32.mrb[55].mxu1  ;;  %1493 = vmatmul.mubr.bf16.gmra.mrb[112].mxu0 %v1088_v0  ;;  %1654 = vmatmul.mubr.bf16.gmra.mrb[112].mxu1 %v1090_v32  ;;  %v1016_v20 = vmax.f32 %v691_v37, 0.0 }
 0x1ff   :  { %v1019_v43 = vmax.f32 %v886_v30, 0.0  ;;  %v697_v52 = vadd.f32 %v696_v45, %v2742_v58  ;;  %v890_v16 = vadd.f32 %v889_v48, %v2744_v25  ;;  %v1017_v56 = vmax.f32 %v693_v22, 0.0 }
 0x200   :  { %v1020_v54 = vmax.f32 %v695_v42, 0.0  ;;  %v1022_v24 = vmax.f32 %v888_v44, 0.0 }
 0x201   :  { %v1021_v60 = vmax.f32 %v697_v52, 0.0  ;;  %v1023_v47 = vmax.f32 %v890_v16, 0.0 }
 0x202   :  { %v1092_v39 = vpack.c.bf16 %v1020_v54, %v1016_v20  ;;  %v1094_v50 = vpack.c.bf16 %v1022_v24, %v1018_v40 }
 0x203   :  { %v1093_v35 = vpack.c.bf16 %v1021_v60, %v1017_v56  ;;  %v1095_v41 = vpack.c.bf16 %v1023_v47, %v1019_v43  ;;  %v700_v2 = vpop.f32.mrb[56].mxu0  ;;  %v893_v3 = vpop.f32.mrb[56].mxu1 }
 0x204   :  { %v701_v46 = vadd.f32 %v700_v2, %v2738_v62  ;;  %v894_v5 = vadd.f32 %v893_v3, %v2740_v9  ;;  %v702_v49 = vpop.f32.mrb[57].mxu0  ;;  %v895_v51 = vpop.f32.mrb[57].mxu1 }
 0x205   :  { %v703_v10 = vadd.f32 %v702_v49, %v2742_v58  ;;  %v896_v53 = vadd.f32 %v895_v51, %v2744_v25  ;;  %v704_v13 = vpop.f32.mrb[58].mxu0  ;;  %v897_v15 = vpop.f32.mrb[58].mxu1  ;;  %1500 = vmatprep.mubr.bf16.mxu0 %v1093_v35  ;;  %1661 = vmatprep.mubr.bf16.mxu1 %v1095_v41 }
 0x206   :  { %v1026_v18 = vmax.f32 %v894_v5, 0.0  ;;  %v705_v1 = vadd.f32 %v704_v13, %v2738_v62  ;;  %v898_v19 = vadd.f32 %v897_v15, %v2740_v9  ;;  %v706_v55 = vpop.f32.mrb[59].mxu0  ;;  %v899_v59 = vpop.f32.mrb[59].mxu1  ;;  %1501 = vmatmul.mubr.bf16.gmra.mrb[116].mxu0 %v1092_v39  ;;  %1662 = vmatmul.mubr.bf16.gmra.mrb[116].mxu1 %v1094_v50  ;;  %v1024_v11 = vmax.f32 %v701_v46, 0.0  ;;  %v2874_v39 = vld [vmem:[#allocation5 + $0x3] ss:$0 sm:$0xff] }
 0x207   :  { %v1027_v21 = vmax.f32 %v896_v53, 0.0  ;;  %v707_v23 = vadd.f32 %v706_v55, %v2742_v58  ;;  %v900_v6 = vadd.f32 %v899_v59, %v2744_v25  ;;  %v1025_v4 = vmax.f32 %v703_v10, 0.0  ;;  %v2152_v13 = vld [vmem:[#allocation2] sm:$0xff] }
 0x208   :  { %v1028_v27 = vmax.f32 %v705_v1, 0.0  ;;  %v1030_v63 = vmax.f32 %v898_v19, 0.0 }
 0x209   :  { %v1029_v28 = vmax.f32 %v707_v23, 0.0  ;;  %v1031_v26 = vmax.f32 %v900_v6, 0.0 }
 0x20a   :  { %v1096_v8 = vpack.c.bf16 %v1028_v27, %v1024_v11  ;;  %v1098_v12 = vpack.c.bf16 %v1030_v63, %v1026_v18 }
 0x20b   :  { %v1097_v7 = vpack.c.bf16 %v1029_v28, %v1025_v4  ;;  %v1099_v14 = vpack.c.bf16 %v1031_v26, %v1027_v21  ;;  %v710_v0 = vpop.f32.mrb[60].mxu0  ;;  %v903_v32 = vpop.f32.mrb[60].mxu1  ;;  %v2153_v21 = vld [vmem:[#allocation2 + $0x8] sm:$0xff] }
 0x20c   :  { %v711_v29 = vadd.f32 %v710_v0, %v2738_v62  ;;  %v904_v31 = vadd.f32 %v903_v32, %v2740_v9  ;;  %v712_v33 = vpop.f32.mrb[61].mxu0  ;;  %v905_v17 = vpop.f32.mrb[61].mxu1  ;;  %v2154_v0 = vld [vmem:[#allocation2 + $0x10] sm:$0xff] }
 0x20d   :  { %v713_v37 = vadd.f32 %v712_v33, %v2742_v58  ;;  %v906_v57 = vadd.f32 %v905_v17, %v2744_v25  ;;  %v714_v61 = vpop.f32.mrb[62].mxu0  ;;  %v907_v34 = vpop.f32.mrb[62].mxu1  ;;  %1508 = vmatprep.mubr.bf16.mxu0 %v1097_v7  ;;  %1669 = vmatprep.mubr.bf16.mxu1 %v1099_v14 }
 0x20e   :  { %v1034_v22 = vmax.f32 %v904_v31, 0.0  ;;  %v715_v30 = vadd.f32 %v714_v61, %v2738_v62  ;;  %v908_v36 = vadd.f32 %v907_v34, %v2740_v9  ;;  %v716_v38 = vpop.f32.mrb[63].mxu0  ;;  %v909_v40 = vpop.f32.mrb[63].mxu1  ;;  %1509 = vmatmul.mubr.bf16.gmra.mrb[120].mxu0 %v1096_v8  ;;  %1670 = vmatmul.mubr.bf16.gmra.mrb[120].mxu1 %v1098_v12  ;;  %v1032_v48 = vmax.f32 %v711_v29, 0.0 }
 0x20f   :  { %v1035_v42 = vmax.f32 %v906_v57, 0.0  ;;  %v717_v44 = vadd.f32 %v716_v38, %v2742_v58  ;;  %v910_v45 = vadd.f32 %v909_v40, %v2744_v25  ;;  %v1033_v16 = vmax.f32 %v713_v37, 0.0  ;;  %v2155_v57 = vld [vmem:[#allocation2 + $0x18] sm:$0xff] }
 0x210   :  { %v1036_v43 = vmax.f32 %v715_v30, 0.0  ;;  %v1038_v52 = vmax.f32 %v908_v36, 0.0 }
 0x211   :  { %v1037_v20 = vmax.f32 %v717_v44, 0.0  ;;  %v1039_v54 = vmax.f32 %v910_v45, 0.0 }
 0x212   :  { %v1100_v24 = vpack.c.bf16 %v1036_v43, %v1032_v48  ;;  %v1102_v56 = vpack.c.bf16 %v1038_v52, %v1034_v22  ;;  %v2156_v52 = vld [vmem:[#allocation2 + $0x20] sm:$0xff] }
 0x213   :  { %v1101_v62 = vpack.c.bf16 %v1037_v20, %v1033_v16  ;;  %v1103_v60 = vpack.c.bf16 %v1039_v54, %v1035_v42 }
 0x215   :  { %1516 = vmatprep.mubr.bf16.mxu0 %v1101_v62  ;;  %1677 = vmatprep.mubr.bf16.mxu1 %v1103_v60  ;;  %v2157_v60 = vld [vmem:[#allocation2 + $0x28] sm:$0xff] }
 0x216   :  { %1517 = vmatmul.mubr.bf16.gmra.mrb[124].mxu0 %v1100_v24  ;;  %1678 = vmatmul.mubr.bf16.gmra.mrb[124].mxu1 %v1102_v56 }
 0x271   :  { %v1850_v9 = vpop.f32.mrb[64].mxu0  ;;  %v1962_v47 = vpop.f32.mrb[64].mxu1 }
 0x272   :  { %v1851_v58 = vpop.f32.mrb[65].mxu0  ;;  %v1963_v25 = vpop.f32.mrb[65].mxu1 }
 0x273   :  { %v1852_v50 = vadd.f32 %v1851_v58, %v1850_v9  ;;  %v1964_v35 = vadd.f32 %v1963_v25, %v1962_v47  ;;  %v1853_v41 = vpop.f32.mrb[66].mxu0  ;;  %v1965_v2 = vpop.f32.mrb[66].mxu1 }
 0x274   :  { %v1854_v3 = vpop.f32.mrb[67].mxu0  ;;  %v1966_v46 = vpop.f32.mrb[67].mxu1 }
 0x275   :  { %v1399_v5 = vadd.f32 %v1852_v50, %v2874_v39  ;;  %v1855_v49 = vadd.f32 %v1854_v3, %v1853_v41  ;;  %v1967_v51 = vadd.f32 %v1966_v46, %v1965_v2 }
 0x277   :  { %v1560_v10 = vadd.f32 %v1964_v35, %v1399_v5  ;;  %v1402_v53 = vadd.f32 %v1855_v49, %v2874_v39 }
 0x279   :  { %v1686_v15 = vadd.f32 %v2152_v13, %v1560_v10  ;;  %v1563_v18 = vadd.f32 %v1967_v51, %v1402_v53  ;;  %v1856_v1 = vpop.f32.mrb[68].mxu0  ;;  %v1968_v19 = vpop.f32.mrb[68].mxu1  ;;  %v2158_v51 = vld [vmem:[#allocation2 + $0x30] sm:$0xff] }
 0x27a   :  { %v1857_v55 = vpop.f32.mrb[69].mxu0  ;;  %v1969_v59 = vpop.f32.mrb[69].mxu1 }
 0x27b   :  { %1718 = vst [vmem:[#allocation10] sm:$0xff] %v1686_v15  ;;  %v1687_v23 = vadd.f32 %v2153_v21, %v1563_v18  ;;  %v1858_v6 = vadd.f32 %v1857_v55, %v1856_v1  ;;  %v1970_v11 = vadd.f32 %v1969_v59, %v1968_v19  ;;  %v1859_v27 = vpop.f32.mrb[70].mxu0  ;;  %v1971_v63 = vpop.f32.mrb[70].mxu1  ;;  %v2159_v19 = vld [vmem:[#allocation2 + $0x38] sm:$0xff] }
 0x27c   :  { %v1860_v4 = vpop.f32.mrb[71].mxu0  ;;  %v1972_v28 = vpop.f32.mrb[71].mxu1 }
 0x27d   :  { %1719 = vst [vmem:[#allocation10 + $0x8] sm:$0xff] %v1687_v23  ;;  %v1407_v26 = vadd.f32 %v1858_v6, %v2874_v39  ;;  %v1861_v8 = vadd.f32 %v1860_v4, %v1859_v27  ;;  %v1973_v12 = vadd.f32 %v1972_v28, %v1971_v63 }
 0x27f   :  { %v1568_v7 = vadd.f32 %v1970_v11, %v1407_v26  ;;  %v1410_v14 = vadd.f32 %v1861_v8, %v2874_v39 }
 0x281   :  { %v1688_v32 = vadd.f32 %v2154_v0, %v1568_v7  ;;  %v1571_v29 = vadd.f32 %v1973_v12, %v1410_v14  ;;  %v1862_v31 = vpop.f32.mrb[72].mxu0  ;;  %v1974_v33 = vpop.f32.mrb[72].mxu1  ;;  %v2160_v12 = vld [vmem:[#allocation2 + $0x40] sm:$0xff] }
 0x282   :  { %v1863_v17 = vpop.f32.mrb[73].mxu0  ;;  %v1975_v37 = vpop.f32.mrb[73].mxu1 }
 0x283   :  { %1720 = vst [vmem:[#allocation10 + $0x10] sm:$0xff] %v1688_v32  ;;  %v1689_v61 = vadd.f32 %v2155_v57, %v1571_v29  ;;  %v1864_v34 = vadd.f32 %v1863_v17, %v1862_v31  ;;  %v1976_v22 = vadd.f32 %v1975_v37, %v1974_v33  ;;  %v1865_v30 = vpop.f32.mrb[74].mxu0  ;;  %v1977_v36 = vpop.f32.mrb[74].mxu1  ;;  %v2161_v33 = vld [vmem:[#allocation2 + $0x48] sm:$0xff] }
 0x284   :  { %v1866_v38 = vpop.f32.mrb[75].mxu0  ;;  %v1978_v40 = vpop.f32.mrb[75].mxu1 }
 0x285   :  { %1721 = vst [vmem:[#allocation10 + $0x18] sm:$0xff] %v1689_v61  ;;  %v1415_v42 = vadd.f32 %v1864_v34, %v2874_v39  ;;  %v1867_v44 = vadd.f32 %v1866_v38, %v1865_v30  ;;  %v1979_v45 = vadd.f32 %v1978_v40, %v1977_v36 }
 0x287   :  { %v1576_v48 = vadd.f32 %v1976_v22, %v1415_v42  ;;  %v1418_v43 = vadd.f32 %v1867_v44, %v2874_v39 }
 0x289   :  { %v1690_v16 = vadd.f32 %v2156_v52, %v1576_v48  ;;  %v1579_v20 = vadd.f32 %v1979_v45, %v1418_v43  ;;  %v1868_v54 = vpop.f32.mrb[76].mxu0  ;;  %v1980_v24 = vpop.f32.mrb[76].mxu1  ;;  %v2162_v45 = vld [vmem:[#allocation2 + $0x50] sm:$0xff] }
 0x28a   :  { %v1869_v56 = vpop.f32.mrb[77].mxu0  ;;  %v1981_v62 = vpop.f32.mrb[77].mxu1 }
 0x28b   :  { %1722 = vst [vmem:[#allocation10 + $0x20] sm:$0xff] %v1690_v16  ;;  %v1691_v9 = vadd.f32 %v2157_v60, %v1579_v20  ;;  %v1870_v47 = vadd.f32 %v1869_v56, %v1868_v54  ;;  %v1982_v58 = vadd.f32 %v1981_v62, %v1980_v24  ;;  %v1871_v25 = vpop.f32.mrb[78].mxu0  ;;  %v1983_v50 = vpop.f32.mrb[78].mxu1  ;;  %v2163_v24 = vld [vmem:[#allocation2 + $0x58] sm:$0xff] }
 0x28c   :  { %v1872_v35 = vpop.f32.mrb[79].mxu0  ;;  %v1984_v41 = vpop.f32.mrb[79].mxu1 }
 0x28d   :  { %1723 = vst [vmem:[#allocation10 + $0x28] sm:$0xff] %v1691_v9  ;;  %v1423_v2 = vadd.f32 %v1870_v47, %v2874_v39  ;;  %v1873_v3 = vadd.f32 %v1872_v35, %v1871_v25  ;;  %v1985_v46 = vadd.f32 %v1984_v41, %v1983_v50 }
 0x28f   :  { %v1584_v5 = vadd.f32 %v1982_v58, %v1423_v2  ;;  %v1426_v49 = vadd.f32 %v1873_v3, %v2874_v39 }
 0x291   :  { %v1692_v10 = vadd.f32 %v2158_v51, %v1584_v5  ;;  %v1587_v53 = vadd.f32 %v1985_v46, %v1426_v49  ;;  %v1874_v13 = vpop.f32.mrb[80].mxu0  ;;  %v1986_v15 = vpop.f32.mrb[80].mxu1  ;;  %v2164_v46 = vld [vmem:[#allocation2 + $0x60] sm:$0xff] }
 0x292   :  { %v1875_v18 = vpop.f32.mrb[81].mxu0  ;;  %v1987_v1 = vpop.f32.mrb[81].mxu1 }
 0x293   :  { %1724 = vst [vmem:[#allocation10 + $0x30] sm:$0xff] %v1692_v10  ;;  %v1693_v55 = vadd.f32 %v2159_v19, %v1587_v53  ;;  %v1876_v59 = vadd.f32 %v1875_v18, %v1874_v13  ;;  %v1988_v21 = vadd.f32 %v1987_v1, %v1986_v15  ;;  %v1877_v23 = vpop.f32.mrb[82].mxu0  ;;  %v1989_v6 = vpop.f32.mrb[82].mxu1  ;;  %v2165_v15 = vld [vmem:[#allocation2 + $0x68] sm:$0xff] }
 0x294   :  { %v1878_v11 = vpop.f32.mrb[83].mxu0  ;;  %v1990_v27 = vpop.f32.mrb[83].mxu1 }
 0x295   :  { %1725 = vst [vmem:[#allocation10 + $0x38] sm:$0xff] %v1693_v55  ;;  %v1431_v63 = vadd.f32 %v1876_v59, %v2874_v39  ;;  %v1879_v4 = vadd.f32 %v1878_v11, %v1877_v23  ;;  %v1991_v28 = vadd.f32 %v1990_v27, %v1989_v6 }
 0x297   :  { %v1592_v26 = vadd.f32 %v1988_v21, %v1431_v63  ;;  %v1434_v8 = vadd.f32 %v1879_v4, %v2874_v39 }
 0x299   :  { %v1694_v7 = vadd.f32 %v2160_v12, %v1592_v26  ;;  %v1595_v14 = vadd.f32 %v1991_v28, %v1434_v8  ;;  %v1880_v0 = vpop.f32.mrb[84].mxu0  ;;  %v1992_v32 = vpop.f32.mrb[84].mxu1  ;;  %v2166_v28 = vld [vmem:[#allocation2 + $0x70] sm:$0xff] }
 0x29a   :  { %v1881_v29 = vpop.f32.mrb[85].mxu0  ;;  %v1993_v31 = vpop.f32.mrb[85].mxu1 }
 0x29b   :  { %1726 = vst [vmem:[#allocation10 + $0x40] sm:$0xff] %v1694_v7  ;;  %v1695_v17 = vadd.f32 %v2161_v33, %v1595_v14  ;;  %v1882_v37 = vadd.f32 %v1881_v29, %v1880_v0  ;;  %v1994_v57 = vadd.f32 %v1993_v31, %v1992_v32  ;;  %v1883_v61 = vpop.f32.mrb[86].mxu0  ;;  %v1995_v34 = vpop.f32.mrb[86].mxu1  ;;  %v2167_v32 = vld [vmem:[#allocation2 + $0x78] sm:$0xff] }
 0x29c   :  { %v1884_v22 = vpop.f32.mrb[87].mxu0  ;;  %v1996_v30 = vpop.f32.mrb[87].mxu1 }
 0x29d   :  { %1727 = vst [vmem:[#allocation10 + $0x48] sm:$0xff] %v1695_v17  ;;  %v1439_v36 = vadd.f32 %v1882_v37, %v2874_v39  ;;  %v1885_v38 = vadd.f32 %v1884_v22, %v1883_v61  ;;  %v1997_v40 = vadd.f32 %v1996_v30, %v1995_v34 }
 0x29f   :  { %v1600_v42 = vadd.f32 %v1994_v57, %v1439_v36  ;;  %v1442_v44 = vadd.f32 %v1885_v38, %v2874_v39 }
 0x2a1   :  { %v1696_v48 = vadd.f32 %v2162_v45, %v1600_v42  ;;  %v1603_v43 = vadd.f32 %v1997_v40, %v1442_v44  ;;  %v1886_v52 = vpop.f32.mrb[88].mxu0  ;;  %v1998_v16 = vpop.f32.mrb[88].mxu1  ;;  %v2168_v40 = vld [vmem:[#allocation2 + $0x80] sm:$0xff] }
 0x2a2   :  { %v1887_v20 = vpop.f32.mrb[89].mxu0  ;;  %v1999_v54 = vpop.f32.mrb[89].mxu1 }
 0x2a3   :  { %1728 = vst [vmem:[#allocation10 + $0x50] sm:$0xff] %v1696_v48  ;;  %v1697_v56 = vadd.f32 %v2163_v24, %v1603_v43  ;;  %v1888_v62 = vadd.f32 %v1887_v20, %v1886_v52  ;;  %v2000_v60 = vadd.f32 %v1999_v54, %v1998_v16  ;;  %v1889_v9 = vpop.f32.mrb[90].mxu0  ;;  %v2001_v47 = vpop.f32.mrb[90].mxu1  ;;  %v2169_v16 = vld [vmem:[#allocation2 + $0x88] sm:$0xff] }
 0x2a4   :  { %v1890_v58 = vpop.f32.mrb[91].mxu0  ;;  %v2002_v25 = vpop.f32.mrb[91].mxu1 }
 0x2a5   :  { %1729 = vst [vmem:[#allocation10 + $0x58] sm:$0xff] %v1697_v56  ;;  %v1447_v50 = vadd.f32 %v1888_v62, %v2874_v39  ;;  %v1891_v35 = vadd.f32 %v1890_v58, %v1889_v9  ;;  %v2003_v41 = vadd.f32 %v2002_v25, %v2001_v47 }
 0x2a7   :  { %v1608_v2 = vadd.f32 %v2000_v60, %v1447_v50  ;;  %v1450_v3 = vadd.f32 %v1891_v35, %v2874_v39 }
 0x2a9   :  { %v1698_v5 = vadd.f32 %v2164_v46, %v1608_v2  ;;  %v1611_v49 = vadd.f32 %v2003_v41, %v1450_v3  ;;  %v1892_v51 = vpop.f32.mrb[92].mxu0  ;;  %v2004_v10 = vpop.f32.mrb[92].mxu1  ;;  %v2170_v41 = vld [vmem:[#allocation2 + $0x90] sm:$0xff] }
 0x2aa   :  { %v1893_v53 = vpop.f32.mrb[93].mxu0  ;;  %v2005_v13 = vpop.f32.mrb[93].mxu1 }
 0x2ab   :  { %1730 = vst [vmem:[#allocation10 + $0x60] sm:$0xff] %v1698_v5  ;;  %v1699_v18 = vadd.f32 %v2165_v15, %v1611_v49  ;;  %v1894_v1 = vadd.f32 %v1893_v53, %v1892_v51  ;;  %v2006_v19 = vadd.f32 %v2005_v13, %v2004_v10  ;;  %v1895_v55 = vpop.f32.mrb[94].mxu0  ;;  %v2007_v59 = vpop.f32.mrb[94].mxu1  ;;  %v2171_v10 = vld [vmem:[#allocation2 + $0x98] sm:$0xff] }
 0x2ac   :  { %v1896_v21 = vpop.f32.mrb[95].mxu0  ;;  %v2008_v23 = vpop.f32.mrb[95].mxu1 }
 0x2ad   :  { %1731 = vst [vmem:[#allocation10 + $0x68] sm:$0xff] %v1699_v18  ;;  %v1455_v6 = vadd.f32 %v1894_v1, %v2874_v39  ;;  %v1897_v11 = vadd.f32 %v1896_v21, %v1895_v55  ;;  %v2009_v27 = vadd.f32 %v2008_v23, %v2007_v59 }
 0x2af   :  { %v1616_v63 = vadd.f32 %v2006_v19, %v1455_v6  ;;  %v1458_v4 = vadd.f32 %v1897_v11, %v2874_v39 }
 0x2b1   :  { %v1700_v26 = vadd.f32 %v2166_v28, %v1616_v63  ;;  %v1619_v8 = vadd.f32 %v2009_v27, %v1458_v4  ;;  %v1898_v12 = vpop.f32.mrb[96].mxu0  ;;  %v2010_v7 = vpop.f32.mrb[96].mxu1  ;;  %v2172_v27 = vld [vmem:[#allocation2 + $0xa0] sm:$0xff] }
 0x2b2   :  { %v1899_v14 = vpop.f32.mrb[97].mxu0  ;;  %v2011_v0 = vpop.f32.mrb[97].mxu1 }
 0x2b3   :  { %1732 = vst [vmem:[#allocation10 + $0x70] sm:$0xff] %v1700_v26  ;;  %v1701_v29 = vadd.f32 %v2167_v32, %v1619_v8  ;;  %v1900_v31 = vadd.f32 %v1899_v14, %v1898_v12  ;;  %v2012_v33 = vadd.f32 %v2011_v0, %v2010_v7  ;;  %v1901_v17 = vpop.f32.mrb[98].mxu0  ;;  %v2013_v37 = vpop.f32.mrb[98].mxu1  ;;  %v2173_v7 = vld [vmem:[#allocation2 + $0xa8] sm:$0xff] }
 0x2b4   :  { %v1902_v57 = vpop.f32.mrb[99].mxu0  ;;  %v2014_v61 = vpop.f32.mrb[99].mxu1 }
 0x2b5   :  { %1733 = vst [vmem:[#allocation10 + $0x78] sm:$0xff] %v1701_v29  ;;  %v1463_v34 = vadd.f32 %v1900_v31, %v2874_v39  ;;  %v1903_v22 = vadd.f32 %v1902_v57, %v1901_v17  ;;  %v2015_v30 = vadd.f32 %v2014_v61, %v2013_v37 }
 0x2b7   :  { %v1624_v36 = vadd.f32 %v2012_v33, %v1463_v34  ;;  %v1466_v38 = vadd.f32 %v1903_v22, %v2874_v39 }
 0x2b9   :  { %v1702_v42 = vadd.f32 %v2168_v40, %v1624_v36  ;;  %v1627_v44 = vadd.f32 %v2015_v30, %v1466_v38  ;;  %v1904_v45 = vpop.f32.mrb[100].mxu0  ;;  %v2016_v48 = vpop.f32.mrb[100].mxu1  ;;  %v2174_v30 = vld [vmem:[#allocation2 + $0xb0] sm:$0xff] }
 0x2ba   :  { %v1905_v43 = vpop.f32.mrb[101].mxu0  ;;  %v2017_v52 = vpop.f32.mrb[101].mxu1 }
 0x2bb   :  { %1734 = vst [vmem:[#allocation10 + $0x80] sm:$0xff] %v1702_v42  ;;  %v1703_v20 = vadd.f32 %v2169_v16, %v1627_v44  ;;  %v1906_v54 = vadd.f32 %v1905_v43, %v1904_v45  ;;  %v2018_v24 = vadd.f32 %v2017_v52, %v2016_v48  ;;  %v1907_v56 = vpop.f32.mrb[102].mxu0  ;;  %v2019_v62 = vpop.f32.mrb[102].mxu1  ;;  %v2175_v48 = vld [vmem:[#allocation2 + $0xb8] sm:$0xff] }
 0x2bc   :  { %v1908_v60 = vpop.f32.mrb[103].mxu0  ;;  %v2020_v9 = vpop.f32.mrb[103].mxu1 }
 0x2bd   :  { %1735 = vst [vmem:[#allocation10 + $0x88] sm:$0xff] %v1703_v20  ;;  %v1471_v47 = vadd.f32 %v1906_v54, %v2874_v39  ;;  %v1909_v58 = vadd.f32 %v1908_v60, %v1907_v56  ;;  %v2021_v25 = vadd.f32 %v2020_v9, %v2019_v62 }
 0x2bf   :  { %v1632_v50 = vadd.f32 %v2018_v24, %v1471_v47  ;;  %v1474_v35 = vadd.f32 %v1909_v58, %v2874_v39 }
 0x2c1   :  { %v1704_v2 = vadd.f32 %v2170_v41, %v1632_v50  ;;  %v1635_v3 = vadd.f32 %v2021_v25, %v1474_v35  ;;  %v1910_v46 = vpop.f32.mrb[104].mxu0  ;;  %v2022_v5 = vpop.f32.mrb[104].mxu1  ;;  %v2176_v25 = vld [vmem:[#allocation2 + $0xc0] sm:$0xff] }
 0x2c2   :  { %v1911_v49 = vpop.f32.mrb[105].mxu0  ;;  %v2023_v51 = vpop.f32.mrb[105].mxu1 }
 0x2c3   :  { %1736 = vst [vmem:[#allocation10 + $0x90] sm:$0xff] %v1704_v2  ;;  %v1705_v53 = vadd.f32 %v2171_v10, %v1635_v3  ;;  %v1912_v13 = vadd.f32 %v1911_v49, %v1910_v46  ;;  %v2024_v15 = vadd.f32 %v2023_v51, %v2022_v5  ;;  %v1913_v18 = vpop.f32.mrb[106].mxu0  ;;  %v2025_v1 = vpop.f32.mrb[106].mxu1  ;;  %v2177_v5 = vld [vmem:[#allocation2 + $0xc8] sm:$0xff] }
 0x2c4   :  { %v1914_v19 = vpop.f32.mrb[107].mxu0  ;;  %v2026_v55 = vpop.f32.mrb[107].mxu1 }
 0x2c5   :  { %1737 = vst [vmem:[#allocation10 + $0x98] sm:$0xff] %v1705_v53  ;;  %v1479_v59 = vadd.f32 %v1912_v13, %v2874_v39  ;;  %v1915_v21 = vadd.f32 %v1914_v19, %v1913_v18  ;;  %v2027_v23 = vadd.f32 %v2026_v55, %v2025_v1 }
 0x2c7   :  { %v1640_v6 = vadd.f32 %v2024_v15, %v1479_v59  ;;  %v1482_v11 = vadd.f32 %v1915_v21, %v2874_v39 }
 0x2c9   :  { %v1706_v63 = vadd.f32 %v2172_v27, %v1640_v6  ;;  %v1643_v4 = vadd.f32 %v2027_v23, %v1482_v11  ;;  %v1916_v28 = vpop.f32.mrb[108].mxu0  ;;  %v2028_v26 = vpop.f32.mrb[108].mxu1  ;;  %v2178_v23 = vld [vmem:[#allocation2 + $0xd0] sm:$0xff] }
 0x2ca   :  { %v1917_v8 = vpop.f32.mrb[109].mxu0  ;;  %v2029_v12 = vpop.f32.mrb[109].mxu1 }
 0x2cb   :  { %1738 = vst [vmem:[#allocation10 + $0xa0] sm:$0xff] %v1706_v63  ;;  %v1707_v14 = vadd.f32 %v2173_v7, %v1643_v4  ;;  %v1918_v0 = vadd.f32 %v1917_v8, %v1916_v28  ;;  %v2030_v32 = vadd.f32 %v2029_v12, %v2028_v26  ;;  %v1919_v29 = vpop.f32.mrb[110].mxu0  ;;  %v2031_v31 = vpop.f32.mrb[110].mxu1  ;;  %v2179_v26 = vld [vmem:[#allocation2 + $0xd8] sm:$0xff] }
 0x2cc   :  { %v1920_v33 = vpop.f32.mrb[111].mxu0  ;;  %v2032_v17 = vpop.f32.mrb[111].mxu1 }
 0x2cd   :  { %1739 = vst [vmem:[#allocation10 + $0xa8] sm:$0xff] %v1707_v14  ;;  %v1487_v37 = vadd.f32 %v1918_v0, %v2874_v39  ;;  %v1921_v57 = vadd.f32 %v1920_v33, %v1919_v29  ;;  %v2033_v61 = vadd.f32 %v2032_v17, %v2031_v31 }
 0x2cf   :  { %v1648_v34 = vadd.f32 %v2030_v32, %v1487_v37  ;;  %v1490_v22 = vadd.f32 %v1921_v57, %v2874_v39 }
 0x2d1   :  { %v1708_v36 = vadd.f32 %v2174_v30, %v1648_v34  ;;  %v1651_v38 = vadd.f32 %v2033_v61, %v1490_v22  ;;  %v1922_v40 = vpop.f32.mrb[112].mxu0  ;;  %v2034_v42 = vpop.f32.mrb[112].mxu1  ;;  %v2180_v61 = vld [vmem:[#allocation2 + $0xe0] sm:$0xff] }
 0x2d2   :  { %v1923_v44 = vpop.f32.mrb[113].mxu0  ;;  %v2035_v45 = vpop.f32.mrb[113].mxu1 }
 0x2d3   :  { %1740 = vst [vmem:[#allocation10 + $0xb0] sm:$0xff] %v1708_v36  ;;  %v1709_v43 = vadd.f32 %v2175_v48, %v1651_v38  ;;  %v1924_v52 = vadd.f32 %v1923_v44, %v1922_v40  ;;  %v2036_v16 = vadd.f32 %v2035_v45, %v2034_v42  ;;  %v1925_v20 = vpop.f32.mrb[114].mxu0  ;;  %v2037_v54 = vpop.f32.mrb[114].mxu1  ;;  %v2181_v42 = vld [vmem:[#allocation2 + $0xe8] sm:$0xff] }
 0x2d4   :  { %v1926_v24 = vpop.f32.mrb[115].mxu0  ;;  %v2038_v56 = vpop.f32.mrb[115].mxu1 }
 0x2d5   :  { %1741 = vst [vmem:[#allocation10 + $0xb8] sm:$0xff] %v1709_v43  ;;  %v1495_v62 = vadd.f32 %v1924_v52, %v2874_v39  ;;  %v1927_v60 = vadd.f32 %v1926_v24, %v1925_v20  ;;  %v2039_v9 = vadd.f32 %v2038_v56, %v2037_v54 }
 0x2d7   :  { %v1656_v47 = vadd.f32 %v2036_v16, %v1495_v62  ;;  %v1498_v58 = vadd.f32 %v1927_v60, %v2874_v39 }
 0x2d9   :  { %v1710_v50 = vadd.f32 %v2176_v25, %v1656_v47  ;;  %v1659_v35 = vadd.f32 %v2039_v9, %v1498_v58  ;;  %v1928_v41 = vpop.f32.mrb[116].mxu0  ;;  %v2040_v2 = vpop.f32.mrb[116].mxu1  ;;  %v2182_v9 = vld [vmem:[#allocation2 + $0xf0] sm:$0xff]  ;;  %v2183_v25 = vld [vmem:[#allocation2 + $0xf8] sm:$0xff] }
 0x2da   :  { %v1929_v3 = vpop.f32.mrb[117].mxu0  ;;  %v2041_v46 = vpop.f32.mrb[117].mxu1 }
 0x2db   :  { %1742 = vst [vmem:[#allocation10 + $0xc0] sm:$0xff] %v1710_v50  ;;  %v1711_v49 = vadd.f32 %v2177_v5, %v1659_v35  ;;  %v1930_v51 = vadd.f32 %v1929_v3, %v1928_v41  ;;  %v2042_v10 = vadd.f32 %v2041_v46, %v2040_v2  ;;  %v1931_v53 = vpop.f32.mrb[118].mxu0  ;;  %v2043_v13 = vpop.f32.mrb[118].mxu1 }
 0x2dc   :  { %v1932_v15 = vpop.f32.mrb[119].mxu0  ;;  %v2044_v18 = vpop.f32.mrb[119].mxu1 }
 0x2dd   :  { %1743 = vst [vmem:[#allocation10 + $0xc8] sm:$0xff] %v1711_v49  ;;  %v1503_v1 = vadd.f32 %v1930_v51, %v2874_v39  ;;  %v1933_v19 = vadd.f32 %v1932_v15, %v1931_v53  ;;  %v2045_v55 = vadd.f32 %v2044_v18, %v2043_v13 }
 0x2df   :  { %v1664_v59 = vadd.f32 %v2042_v10, %v1503_v1  ;;  %v1506_v21 = vadd.f32 %v1933_v19, %v2874_v39 }
 0x2e1   :  { %v1712_v6 = vadd.f32 %v2178_v23, %v1664_v59  ;;  %v1667_v11 = vadd.f32 %v2045_v55, %v1506_v21  ;;  %v1934_v27 = vpop.f32.mrb[120].mxu0  ;;  %v2046_v63 = vpop.f32.mrb[120].mxu1 }
 0x2e2   :  { %v1935_v4 = vpop.f32.mrb[121].mxu0  ;;  %v2047_v28 = vpop.f32.mrb[121].mxu1 }
 0x2e3   :  { %1744 = vst [vmem:[#allocation10 + $0xd0] sm:$0xff] %v1712_v6  ;;  %v1713_v8 = vadd.f32 %v2179_v26, %v1667_v11  ;;  %v1936_v12 = vadd.f32 %v1935_v4, %v1934_v27  ;;  %v2048_v7 = vadd.f32 %v2047_v28, %v2046_v63  ;;  %v1937_v14 = vpop.f32.mrb[122].mxu0  ;;  %v2049_v0 = vpop.f32.mrb[122].mxu1 }
 0x2e4   :  { %v1938_v32 = vpop.f32.mrb[123].mxu0  ;;  %v2050_v29 = vpop.f32.mrb[123].mxu1 }
 0x2e5   :  { %1745 = vst [vmem:[#allocation10 + $0xd8] sm:$0xff] %v1713_v8  ;;  %v1511_v31 = vadd.f32 %v1936_v12, %v2874_v39  ;;  %v1939_v33 = vadd.f32 %v1938_v32, %v1937_v14  ;;  %v2051_v17 = vadd.f32 %v2050_v29, %v2049_v0 }
 0x2e7   :  { %v1672_v37 = vadd.f32 %v2048_v7, %v1511_v31  ;;  %v1514_v57 = vadd.f32 %v1939_v33, %v2874_v39 }
 0x2e9   :  { %v1714_v34 = vadd.f32 %v2180_v61, %v1672_v37  ;;  %v1675_v22 = vadd.f32 %v2051_v17, %v1514_v57  ;;  %v1940_v30 = vpop.f32.mrb[124].mxu0  ;;  %v2052_v36 = vpop.f32.mrb[124].mxu1 }
 0x2ea   :  { %v1941_v38 = vpop.f32.mrb[125].mxu0  ;;  %v2053_v40 = vpop.f32.mrb[125].mxu1 }
 0x2eb   :  { %1746 = vst [vmem:[#allocation10 + $0xe0] sm:$0xff] %v1714_v34  ;;  %v1715_v44 = vadd.f32 %v2181_v42, %v1675_v22  ;;  %v1942_v45 = vadd.f32 %v1941_v38, %v1940_v30  ;;  %v2054_v48 = vadd.f32 %v2053_v40, %v2052_v36  ;;  %v1943_v43 = vpop.f32.mrb[126].mxu0  ;;  %v2055_v52 = vpop.f32.mrb[126].mxu1 }
 0x2ec   :  { %v1944_v16 = vpop.f32.mrb[127].mxu0  ;;  %v2056_v20 = vpop.f32.mrb[127].mxu1 }
 0x2ed   :  { %1747 = vst [vmem:[#allocation10 + $0xe8] sm:$0xff] %v1715_v44  ;;  %v1519_v54 = vadd.f32 %v1942_v45, %v2874_v39  ;;  %v1945_v24 = vadd.f32 %v1944_v16, %v1943_v43  ;;  %v2057_v56 = vadd.f32 %v2056_v20, %v2055_v52 }
 0x2ef   :  { %v1680_v62 = vadd.f32 %v2054_v48, %v1519_v54  ;;  %v1522_v60 = vadd.f32 %v1945_v24, %v2874_v39 }
 0x2f1   :  { %v1716_v47 = vadd.f32 %v2182_v9, %v1680_v62  ;;  %v1683_v58 = vadd.f32 %v2057_v56, %v1522_v60 }
 0x2f3   :  { %1748 = vst [vmem:[#allocation10 + $0xf0] sm:$0xff] %v1716_v47  ;;  %v1717_v50 = vadd.f32 %v2183_v25, %v1683_v58 }
 0x2f5   :  { %1749 = vst [vmem:[#allocation10 + $0xf8] sm:$0xff] %v1717_v50 }
 0x2f6   :  { %2283 = shalt.err (!%p2280_p8)
}
 0x2f7   :  { %s2284_s20 = scalar_lea.hbm %s2927_s4, 4096 }
 0x2f8   :  { %p2285_p9 = scmp.ne.s32.totalorder %s2927_s4, %s2284_s20  ;;  %p2288_p10 = scmp.lt.u32.totalorder %s2284_s20, %s2927_s4 }
 0x2fa   :  { %p2290_p11 = pnand %p2288_p10, %p2285_p9 }
 0x2fc   :  { %2293 = shalt.err (!%p2290_p11)
}
 0x2fd   :  { %1761 = dma.vmem_to_hbm [thread:$0]  %s1756_s15, 4096, %s2927_s4, [#allocation4], %s2304_s1, %s2304_s1, %s2305_s11  }
 0x2fe   :  { %2300 = dma.done.wait [#allocation4], 4096  }
 0x2ff   :  { %2301 = vsyncadd [#allocation4], 4294963200 }
 0x300   :  { %1765 = vsyncpa [#allocation3], 1 }
 0x301   :  { %1766 = vsyncpa [#allocation6], 1 }
 0x302   :  { %1767 = vsyncpa [#allocation9], 1 }
 0x303   :  { %1768 = vsyncpa [#allocation4], 1 }

</bundles_post_ra>
